<compile_context>
chip_gen: v7x
topology: tpu7x:2x2x1
jax: 0.10.0
libtpu: 0.0.40
codegen_flags: <defaults>
</compile_context>

<pallas_src>
import functools

import jax
import jax.numpy as jnp
from jax.experimental import pallas as pl
from jax.experimental.pallas import tpu as pltpu


def _rup(x, m):
    return -(-x // m) * m


def _conv_bn_mish_kernel(a_ref, b_ref, w_ref, bias_ref, o_ref, xsh_ref, *,
                         kh_sz, kw_sz, halo, tc, weight_resident):
    # a_ref:    (1, TH, Wp, Cin)             bf16  current row tile of padded input
    # b_ref:    (1, halo, Wp, Cin)           bf16  halo rows just below the row tile
    # w_ref:    (KH, KW*Cin, Cout_p or TC)   bf16  BN-scale-folded, kw-major/cin-minor
    # bias_ref: (1, Cout_p)                  f32   folded BN bias (always resident)
    # o_ref:    (1, TH, OW, TC)              bf16
    # xsh_ref:  (TH+halo, OW, KW*Cin)        bf16  scratch: kw-shifted input slab
    th = a_ref.shape[1]
    ow = o_ref.shape[2]
    cin = a_ref.shape[3]
    kwcin = kw_sz * cin
    j = pl.program_id(2)

    # INVARIANT: the shifted slab is rebuilt only at j == 0 and reused for all
    # Cout tiles of the same (n, row-tile).  This requires the Cout axis to be
    # the innermost grid axis, marked "arbitrary", so every j for a given
    # (b, i) runs consecutively on the same core.  Do NOT reorder the grid or
    # mark axis 2 parallel/core_parallel.
    @pl.when(j == 0)
    def _build_shifted_slab():
        for kw in range(kw_sz):
            lo = kw * cin
            xsh_ref[0:th, :, lo:lo + cin] = a_ref[0, :, kw:kw + ow, :]
            xsh_ref[th:th + halo, :, lo:lo + cin] = b_ref[0, :, kw:kw + ow, :]

    c0 = pl.multiple_of(j * tc, tc)

    # Conv as KH shifted-slab matmuls with contraction KW*Cin: bf16 operands,
    # f32 MXU accumulation.  Only KH (not k*k) partials in the add chain.
    acc = None
    for kh in range(kh_sz):
        lhs = xsh_ref[kh:kh + th, :, :].reshape(th * ow, kwcin)
        rhs = w_ref[kh, :, pl.ds(c0, tc)] if weight_resident else w_ref[kh]
        part = jnp.dot(lhs, rhs, preferred_element_type=jnp.float32)
        acc = part if acc is None else acc + part

    # Folded BatchNorm bias (scale already folded into the weights) + Mish.
    y = acc + bias_ref[:, pl.ds(c0, tc)]                 # (TH*OW, TC) f32
    # Mish: y * tanh(softplus(y)) with the exact identity
    #   tanh(softplus(y)) = ((1+e^y)^2 - 1) / ((1+e^y)^2 + 1)
    # -> one exp + one approx EUP reciprocal.  Clamp keeps e finite; for y>=20
    # the factor equals 1.0 to f32 precision anyway.
    # TODO(synk): on v6e/v7x a bf16 epilogue would halve VALU pressure for
    # small-Cin layers; kept f32 here so one path is correct on v5e as well.
    e = jnp.exp(jnp.minimum(y, 20.0))
    s = (1.0 + e) * (1.0 + e)
    t = (s - 1.0) * pl.reciprocal(s + 1.0, approx=True)
    o_ref[...] = (y * t).reshape(1, th, ow, tc).astype(o_ref.dtype)


def _pick_row_tile(h, halo, wp, ow, cin, kwcin, tc, n, budget):
    """Largest row tile (multiple of `halo`, <= 256 rows) whose per-grid-step
    working set — with physical lane/sublane padding and epilogue temporaries
    included — fits `budget`.  Keeps at least 2 (n, row-tile) work items so
    both TensorCores of a v7x chip get parallel work."""
    cin_l = _rup(cin, 128)        # lane padding of the activation channel dim
    kwcin_l = _rup(kwcin, 128)    # lane padding of the slab contraction dim
    tc_l = _rup(tc, 128)

    cap = min(256, _rup(h, halo))
    th = max(halo, cap - cap % halo)

    def step_bytes(t):
        a_blk = 2 * t * _rup(wp, 16) * cin_l * 2          # row tile, bf16, 2x buf
        b_blk = 2 * halo * _rup(wp, 16) * cin_l * 2       # halo rows, bf16, 2x buf
        xsh = (t + halo) * _rup(ow, 16) * kwcin_l * 2     # shifted slab scratch
        acc = 4 * _rup(t * ow, 8) * tc_l * 4              # f32 acc + Mish temps
        outb = 2 * t * _rup(ow, 16) * tc_l * 2            # bf16 output, 2x buf
        return a_blk + b_blk + xsh + acc + outb

    while th > halo and step_bytes(th) > budget:
        th -= halo
    while th > halo and n * (-(-h // th)) < 2:            # >= 2 parallel items
        th -= halo
    return th


def basic_conv_forward(x_nchw, weight, gamma, beta, running_mean, running_var,
                       *, stride=1, eps=1e-5, out_dtype=jnp.bfloat16):
    """Fused Conv2d(k, s=1, p=k//2, bias=False) + BatchNorm2d(eval) + Mish.

    x_nchw: (N, Cin, H, W) f32; weight: (Cout, Cin, K, K) torch layout.
    BatchNorm uses running stats (inference / folded form).
    """
    assert stride == 1, "kernel implements the module-default stride=1"
    n, cin, h, w = x_nchw.shape
    cout, cin_w, kh_sz, kw_sz = weight.shape
    assert cin == cin_w and kh_sz == kw_sz
    k = kh_sz
    # TODO(synk): k == 1 (pointwise) path — same kernel without halo ref / slab.
    assert k % 2 == 1 and k >= 3, "kernel supports odd k >= 3"
    pad = k // 2
    halo = k - 1
    ow = w
    wp = w + 2 * pad
    kwcin = k * cin

    # ---- BatchNorm fold (inference form): scale into weights, bias separate --
    scale = gamma / jnp.sqrt(running_var + eps)                     # (Cout,)
    bias = (beta - running_mean * scale).astype(jnp.float32)
    w_hwio = jnp.transpose(weight, (2, 3, 1, 0)) * scale            # (K,K,Cin,Cout)
    w_merged = w_hwio.reshape(k, kwcin, cout)                       # kw-major, cin-minor

    # ---- tiling: lane-dense Cout tiles, generation-aware VMEM budget --------
    tc = 128
    cout_p = _rup(cout, tc)
    num_tc = cout_p // tc

    vmem_cap = 64 * 1024 * 1024                 # conservative default (v7x)
    try:
        info = pltpu.get_tpu_info()
        vmem_cap = int(getattr(info, "vmem_capacity_bytes", vmem_cap))
    except Exception:
        pass
    vmem_limit = min(vmem_cap * 5 // 8, 96 * 1024 * 1024)   # ~40 MiB @64, ~80 @128

    # weight residency: keep the whole folded weight in VMEM when small enough
    w_full_bytes = 2 * k * _rup(kwcin, 16) * cout_p * 2     # 2x-buffer conservative
    weight_resident = w_full_bytes <= 8 * 1024 * 1024
    w_step_bytes = (w_full_bytes if weight_resident
                    else 2 * k * _rup(kwcin, 16) * tc * 2)

    budget = max(vmem_limit * 3 // 4 - w_step_bytes, 8 * 1024 * 1024)
    th = _pick_row_tile(h, halo, wp, ow, cin, kwcin, tc, n, budget)
    assert th % halo == 0
    h_pad = _rup(h, th)
    num_th = h_pad // th

    # ---- layout glue ---------------------------------------------------------
    # TODO(synk): keep activations NHWC bf16 end-to-end across layers so this
    # transpose / pad / slice round trip is not paid once per conv.
    x_nhwc = jnp.transpose(x_nchw, (0, 2, 3, 1)).astype(jnp.bfloat16)
    xp = jnp.pad(x_nhwc, ((0, 0), (pad, pad + (h_pad - h)), (pad, pad), (0, 0)))
    w_q = jnp.pad(w_merged, ((0, 0), (0, 0), (0, cout_p - cout))
                  ).astype(jnp.bfloat16)
    bias_p = jnp.pad(bias, (0, cout_p - cout)).reshape(1, cout_p)

    if weight_resident:
        w_spec = pl.BlockSpec((k, kwcin, cout_p), lambda b, i, j: (0, 0, 0))
    else:
        w_spec = pl.BlockSpec((k, kwcin, tc), lambda b, i, j: (0, 0, j))

    kernel = functools.partial(_conv_bn_mish_kernel, kh_sz=k, kw_sz=k,
                               halo=halo, tc=tc,
                               weight_resident=weight_resident)

    out = pl.pallas_call(
        kernel,
        out_shape=jax.ShapeDtypeStruct((n, h_pad, ow, cout_p), out_dtype),
        grid_spec=pltpu.PrefetchScalarGridSpec(
            num_scalar_prefetch=0,
            grid=(n, num_th, num_tc),
            in_specs=[
                # current row tile of the padded input
                pl.BlockSpec((1, th, wp, cin), lambda b, i, j: (b, i, 0, 0)),
                # (k-1)-row halo immediately below the row tile (same array)
                pl.BlockSpec((1, halo, wp, cin),
                             lambda b, i, j: (b, (i + 1) * (th // halo), 0, 0)),
                # BN-scale-folded weights: whole array (resident) or Cout tile
                w_spec,
                # BN bias: whole array, resident (tiny)
                pl.BlockSpec((1, cout_p), lambda b, i, j: (0, 0)),
            ],
            out_specs=pl.BlockSpec((1, th, ow, tc), lambda b, i, j: (b, i, 0, j)),
            scratch_shapes=[pltpu.VMEM((th + halo, ow, kwcin), jnp.bfloat16)],
        ),
        compiler_params=pltpu.CompilerParams(
            dimension_semantics=("parallel", "parallel", "arbitrary"),
            vmem_limit_bytes=int(vmem_limit),
        ),
    )(xp, xp, w_q, bias_p)

    # drop the H-pad rows / Cout-pad channels, back to NCHW
    return jnp.transpose(out[:, :h, :, :cout], (0, 3, 1, 2))


def _reference(x_nchw, weight, gamma, beta, running_mean, running_var, eps=1e-5):
    # pure-JAX f32 reference for sanity checking
    y = jax.lax.conv_general_dilated(
        x_nchw, weight, window_strides=(1, 1), padding="SAME",
        dimension_numbers=("NCHW", "OIHW", "NCHW"))
    s = (gamma / jnp.sqrt(running_var + eps)).reshape(1, -1, 1, 1)
    b = (beta - running_mean * gamma / jnp.sqrt(running_var + eps)).reshape(1, -1, 1, 1)
    y = y * s + b
    return y * jnp.tanh(jax.nn.softplus(y))


if __name__ == "__main__":
    key = jax.random.PRNGKey(0)
    k_x, k_w, k_g, k_b, k_m, k_v = jax.random.split(key, 6)

    N, CIN, COUT, H, W, K = 2, 4, 8, 16, 16, 3

    x = jax.random.normal(k_x, (N, CIN, H, W), dtype=jnp.float32)
    weight = jax.random.normal(k_w, (COUT, CIN, K, K), dtype=jnp.float32) * 0.1
    gamma = jax.random.normal(k_g, (COUT,), dtype=jnp.float32) * 0.1 + 1.0
    beta = jax.random.normal(k_b, (COUT,), dtype=jnp.float32) * 0.1
    running_mean = jax.random.normal(k_m, (COUT,), dtype=jnp.float32) * 0.1
    running_var = jax.random.uniform(k_v, (COUT,), dtype=jnp.float32,
                                     minval=0.5, maxval=1.5)

    out = basic_conv_forward(x, weight, gamma, beta, running_mean, running_var)
    out = jax.block_until_ready(out)

    ref = _reference(x, weight, gamma, beta, running_mean, running_var)
    assert out.shape == (N, COUT, H, W)
    # bf16 MXU inputs + bf16 output + approx-reciprocal Mish -> loose tolerance
    assert jnp.allclose(out.astype(jnp.float32), ref, atol=5e-2, rtol=5e-2), \
        float(jnp.max(jnp.abs(out.astype(jnp.float32) - ref)))

    print("KERNEL_OK")
</pallas_src>

<mosaic_0001>
module attributes {stable_mosaic.version = 11 : i64} {
  func.func @_conv_bn_mish_kernel(%arg0: i32, %arg1: i32, %arg2: i32, %arg3: memref<1x16x18x4xbf16, #tpu.memory_space<vmem>>, %arg4: memref<1x2x18x4xbf16, #tpu.memory_space<vmem>>, %arg5: memref<3x12x128xbf16, #tpu.memory_space<vmem>>, %arg6: memref<1x128xf32, #tpu.memory_space<vmem>>, %arg7: memref<1x16x16x128xbf16, #tpu.memory_space<vmem>>, %arg8: memref<18x16x12xbf16, #tpu.memory_space<vmem>>) attributes {dimension_semantics = [#tpu.dimension_semantics<parallel>, #tpu.dimension_semantics<parallel>, #tpu.dimension_semantics<arbitrary>], iteration_bounds = array<i64: 2, 1, 1>, scalar_prefetch = 0 : i64, scratch_operands = 1 : i64, tpu.core_type = #tpu.core_type<tc>, window_params = [{transform_indices = @transform_0, window_bounds = array<i64: 1, 16, 18, 4>}, {transform_indices = @transform_1, window_bounds = array<i64: 1, 2, 18, 4>}, {pipeline_mode = #tpu.pipeline_mode<synchronous>, transform_indices = @transform_2, window_bounds = array<i64: 3, 12, 128>}, {pipeline_mode = #tpu.pipeline_mode<synchronous>, transform_indices = @transform_3, window_bounds = array<i64: 1, 128>}, {transform_indices = @transform_4, window_bounds = array<i64: 1, 16, 16, 128>}]} {
    %c0_i32 = arith.constant 0 : i32
    %0 = arith.cmpi eq, %arg2, %c0_i32 : i32
    %1 = arith.extui %0 : i1 to i32
    %c0_i32_0 = arith.constant 0 : i32
    %2 = arith.cmpi ne, %1, %c0_i32_0 : i32
    scf.if %2 {
      %c0_25 = arith.constant 0 : index
      %c0_26 = arith.constant 0 : index
      %c0_27 = arith.constant 0 : index
      %c0_28 = arith.constant 0 : index
      %47 = vector.load %arg3[%c0_25, %c0_26, %c0_27, %c0_28] : memref<1x16x18x4xbf16, #tpu.memory_space<vmem>>, vector<1x16x16x4xbf16>
      %48 = vector.shape_cast %47 : vector<1x16x16x4xbf16> to vector<16x16x4xbf16>
      %c0_29 = arith.constant 0 : index
      %c0_30 = arith.constant 0 : index
      %c0_31 = arith.constant 0 : index
      %49 = vector.load %arg8[%c0_29, %c0_30, %c0_31] : memref<18x16x12xbf16, #tpu.memory_space<vmem>>, vector<16x16x4xbf16>
      tpu.vector_store %arg8[%c0_29, %c0_30, %c0_31], %48 {strides = array<i32>} : memref<18x16x12xbf16, #tpu.memory_space<vmem>>, vector<16x16x4xbf16>,
      %c0_32 = arith.constant 0 : index
      %c0_33 = arith.constant 0 : index
      %c0_34 = arith.constant 0 : index
      %c0_35 = arith.constant 0 : index
      %50 = vector.load %arg4[%c0_32, %c0_33, %c0_34, %c0_35] : memref<1x2x18x4xbf16, #tpu.memory_space<vmem>>, vector<1x2x16x4xbf16>
      %51 = vector.shape_cast %50 : vector<1x2x16x4xbf16> to vector<2x16x4xbf16>
      %c16 = arith.constant 16 : index
      %c0_36 = arith.constant 0 : index
      %c0_37 = arith.constant 0 : index
      %52 = vector.load %arg8[%c16, %c0_36, %c0_37] : memref<18x16x12xbf16, #tpu.memory_space<vmem>>, vector<2x16x4xbf16>
      tpu.vector_store %arg8[%c16, %c0_36, %c0_37], %51 {strides = array<i32>} : memref<18x16x12xbf16, #tpu.memory_space<vmem>>, vector<2x16x4xbf16>,
      %c0_38 = arith.constant 0 : index
      %c0_39 = arith.constant 0 : index
      %c1_40 = arith.constant 1 : index
      %c0_41 = arith.constant 0 : index
      %53 = vector.load %arg3[%c0_38, %c0_39, %c1_40, %c0_41] : memref<1x16x18x4xbf16, #tpu.memory_space<vmem>>, vector<1x16x16x4xbf16>
      %54 = vector.shape_cast %53 : vector<1x16x16x4xbf16> to vector<16x16x4xbf16>
      %c0_42 = arith.constant 0 : index
      %c0_43 = arith.constant 0 : index
      %c4 = arith.constant 4 : index
      %55 = vector.load %arg8[%c0_42, %c0_43, %c4] : memref<18x16x12xbf16, #tpu.memory_space<vmem>>, vector<16x16x4xbf16>
      tpu.vector_store %arg8[%c0_42, %c0_43, %c4], %54 {strides = array<i32>} : memref<18x16x12xbf16, #tpu.memory_space<vmem>>, vector<16x16x4xbf16>,
      %c0_44 = arith.constant 0 : index
      %c0_45 = arith.constant 0 : index
      %c1_46 = arith.constant 1 : index
      %c0_47 = arith.constant 0 : index
      %56 = vector.load %arg4[%c0_44, %c0_45, %c1_46, %c0_47] : memref<1x2x18x4xbf16, #tpu.memory_space<vmem>>, vector<1x2x16x4xbf16>
      %57 = vector.shape_cast %56 : vector<1x2x16x4xbf16> to vector<2x16x4xbf16>
      %c16_48 = arith.constant 16 : index
      %c0_49 = arith.constant 0 : index
      %c4_50 = arith.constant 4 : index
      %58 = vector.load %arg8[%c16_48, %c0_49, %c4_50] : memref<18x16x12xbf16, #tpu.memory_space<vmem>>, vector<2x16x4xbf16>
      tpu.vector_store %arg8[%c16_48, %c0_49, %c4_50], %57 {strides = array<i32>} : memref<18x16x12xbf16, #tpu.memory_space<vmem>>, vector<2x16x4xbf16>,
      %c0_51 = arith.constant 0 : index
      %c0_52 = arith.constant 0 : index
      %c2_53 = arith.constant 2 : index
      %c0_54 = arith.constant 0 : index
      %59 = vector.load %arg3[%c0_51, %c0_52, %c2_53, %c0_54] : memref<1x16x18x4xbf16, #tpu.memory_space<vmem>>, vector<1x16x16x4xbf16>
      %60 = vector.shape_cast %59 : vector<1x16x16x4xbf16> to vector<16x16x4xbf16>
      %c0_55 = arith.constant 0 : index
      %c0_56 = arith.constant 0 : index
      %c8 = arith.constant 8 : index
      %61 = vector.load %arg8[%c0_55, %c0_56, %c8] : memref<18x16x12xbf16, #tpu.memory_space<vmem>>, vector<16x16x4xbf16>
      tpu.vector_store %arg8[%c0_55, %c0_56, %c8], %60 {strides = array<i32>} : memref<18x16x12xbf16, #tpu.memory_space<vmem>>, vector<16x16x4xbf16>,
      %c0_57 = arith.constant 0 : index
      %c0_58 = arith.constant 0 : index
      %c2_59 = arith.constant 2 : index
      %c0_60 = arith.constant 0 : index
      %62 = vector.load %arg4[%c0_57, %c0_58, %c2_59, %c0_60] : memref<1x2x18x4xbf16, #tpu.memory_space<vmem>>, vector<1x2x16x4xbf16>
      %63 = vector.shape_cast %62 : vector<1x2x16x4xbf16> to vector<2x16x4xbf16>
      %c16_61 = arith.constant 16 : index
      %c0_62 = arith.constant 0 : index
      %c8_63 = arith.constant 8 : index
      %64 = vector.load %arg8[%c16_61, %c0_62, %c8_63] : memref<18x16x12xbf16, #tpu.memory_space<vmem>>, vector<2x16x4xbf16>
      tpu.vector_store %arg8[%c16_61, %c0_62, %c8_63], %63 {strides = array<i32>} : memref<18x16x12xbf16, #tpu.memory_space<vmem>>, vector<2x16x4xbf16>,
    } else {
    }
    %c128_i32 = arith.constant 128 : i32
    %3 = arith.muli %arg2, %c128_i32 : i32
    %4 = tpu.assume_multiple %3, 128 : i32
    %c0 = arith.constant 0 : index
    %c0_1 = arith.constant 0 : index
    %c0_2 = arith.constant 0 : index
    %5 = vector.load %arg8[%c0, %c0_1, %c0_2] : memref<18x16x12xbf16, #tpu.memory_space<vmem>>, vector<16x16x12xbf16>
    %6 = vector.shape_cast %5 : vector<16x16x12xbf16> to vector<256x12xbf16>
    %c0_3 = arith.constant 0 : index
    %c0_4 = arith.constant 0 : index
    %7 = arith.index_cast %4 : i32 to index
    %8 = vector.load %arg5[%c0_3, %c0_4, %7] : memref<3x12x128xbf16, #tpu.memory_space<vmem>>, vector<1x12x128xbf16>
    %9 = vector.shape_cast %8 : vector<1x12x128xbf16> to vector<12x128xbf16>
    %cst = arith.constant dense<0.000000e+00> : vector<256x128xf32>
    %10 = tpu.matmul %6, %9, %cst {dimension_numbers = #tpu.dot_dimension_numbers<[1], [0], [0], [1], [0, 0, 1, 1], [], []>} : vector<256x12xbf16>, vector<12x128xbf16>, vector<256x128xf32> -> vector<256x128xf32>
    %c1 = arith.constant 1 : index
    %c0_5 = arith.constant 0 : index
    %c0_6 = arith.constant 0 : index
    %11 = vector.load %arg8[%c1, %c0_5, %c0_6] : memref<18x16x12xbf16, #tpu.memory_space<vmem>>, vector<16x16x12xbf16>
    %12 = vector.shape_cast %11 : vector<16x16x12xbf16> to vector<256x12xbf16>
    %c1_7 = arith.constant 1 : index
    %c0_8 = arith.constant 0 : index
    %13 = arith.index_cast %4 : i32 to index
    %14 = vector.load %arg5[%c1_7, %c0_8, %13] : memref<3x12x128xbf16, #tpu.memory_space<vmem>>, vector<1x12x128xbf16>
    %15 = vector.shape_cast %14 : vector<1x12x128xbf16> to vector<12x128xbf16>
    %cst_9 = arith.constant dense<0.000000e+00> : vector<256x128xf32>
    %16 = tpu.matmul %12, %15, %cst_9 {dimension_numbers = #tpu.dot_dimension_numbers<[1], [0], [0], [1], [0, 0, 1, 1], [], []>} : vector<256x12xbf16>, vector<12x128xbf16>, vector<256x128xf32> -> vector<256x128xf32>
    %17 = arith.addf %10, %16 : vector<256x128xf32>
    %c2 = arith.constant 2 : index
    %c0_10 = arith.constant 0 : index
    %c0_11 = arith.constant 0 : index
    %18 = vector.load %arg8[%c2, %c0_10, %c0_11] : memref<18x16x12xbf16, #tpu.memory_space<vmem>>, vector<16x16x12xbf16>
    %19 = vector.shape_cast %18 : vector<16x16x12xbf16> to vector<256x12xbf16>
    %c2_12 = arith.constant 2 : index
    %c0_13 = arith.constant 0 : index
    %20 = arith.index_cast %4 : i32 to index
    %21 = vector.load %arg5[%c2_12, %c0_13, %20] : memref<3x12x128xbf16, #tpu.memory_space<vmem>>, vector<1x12x128xbf16>
    %22 = vector.shape_cast %21 : vector<1x12x128xbf16> to vector<12x128xbf16>
    %cst_14 = arith.constant dense<0.000000e+00> : vector<256x128xf32>
    %23 = tpu.matmul %19, %22, %cst_14 {dimension_numbers = #tpu.dot_dimension_numbers<[1], [0], [0], [1], [0, 0, 1, 1], [], []>} : vector<256x12xbf16>, vector<12x128xbf16>, vector<256x128xf32> -> vector<256x128xf32>
    %24 = arith.addf %17, %23 : vector<256x128xf32>
    %c0_15 = arith.constant 0 : index
    %25 = arith.index_cast %4 : i32 to index
    %26 = vector.load %arg6[%c0_15, %25] : memref<1x128xf32, #tpu.memory_space<vmem>>, vector<1x128xf32>
    %27 = vector.broadcast %26 : vector<1x128xf32> to vector<256x128xf32>
    %28 = arith.addf %24, %27 : vector<256x128xf32>
    %cst_16 = arith.constant 2.000000e+01 : f32
    %29 = vector.broadcast %cst_16 : f32 to vector<256x128xf32>
    %30 = arith.minimumf %28, %29 : vector<256x128xf32>
    %31 = math.exp %30 : vector<256x128xf32>
    %cst_17 = arith.constant 1.000000e+00 : f32
    %32 = vector.broadcast %cst_17 : f32 to vector<256x128xf32>
    %33 = arith.addf %32, %31 : vector<256x128xf32>
    %cst_18 = arith.constant 1.000000e+00 : f32
    %34 = vector.broadcast %cst_18 : f32 to vector<256x128xf32>
    %35 = arith.addf %34, %31 : vector<256x128xf32>
    %36 = arith.mulf %33, %35 : vector<256x128xf32>
    %cst_19 = arith.constant 1.000000e+00 : f32
    %37 = vector.broadcast %cst_19 : f32 to vector<256x128xf32>
    %38 = arith.subf %36, %37 : vector<256x128xf32>
    %cst_20 = arith.constant 1.000000e+00 : f32
    %39 = vector.broadcast %cst_20 : f32 to vector<256x128xf32>
    %40 = arith.addf %36, %39 : vector<256x128xf32>
    %41 = tpu.reciprocal %40 {approx = true} : vector<256x128xf32> -> vector<256x128xf32>
    %42 = arith.mulf %38, %41 : vector<256x128xf32>
    %43 = arith.mulf %28, %42 : vector<256x128xf32>
    %44 = vector.shape_cast %43 : vector<256x128xf32> to vector<1x16x16x128xf32>
    %45 = arith.truncf %44 : vector<1x16x16x128xf32> to vector<1x16x16x128xbf16>
    %c0_21 = arith.constant 0 : index
    %c0_22 = arith.constant 0 : index
    %c0_23 = arith.constant 0 : index
    %c0_24 = arith.constant 0 : index
    %46 = vector.load %arg7[%c0_21, %c0_22, %c0_23, %c0_24] : memref<1x16x16x128xbf16, #tpu.memory_space<vmem>>, vector<1x16x16x128xbf16>
    tpu.vector_store %arg7[%c0_21, %c0_22, %c0_23, %c0_24], %45 {strides = array<i32>} : memref<1x16x16x128xbf16, #tpu.memory_space<vmem>>, vector<1x16x16x128xbf16>,
    return
  }
  func.func @transform_0(%arg0: i32, %arg1: i32, %arg2: i32) -> (i32, i32, i32, i32) {
    %c0_i32 = arith.constant 0 : i32
    %c0_i32_0 = arith.constant 0 : i32
    %c0_i32_1 = arith.constant 0 : i32
    return %arg0, %arg1, %c0_i32, %c0_i32_0 : i32, i32, i32, i32
  }
  func.func @transform_1(%arg0: i32, %arg1: i32, %arg2: i32) -> (i32, i32, i32, i32) {
    %c1_i32 = arith.constant 1 : i32
    %0 = arith.addi %arg1, %c1_i32 : i32
    %c8_i32 = arith.constant 8 : i32
    %1 = arith.muli %0, %c8_i32 : i32
    %c0_i32 = arith.constant 0 : i32
    %c0_i32_0 = arith.constant 0 : i32
    %c0_i32_1 = arith.constant 0 : i32
    return %arg0, %1, %c0_i32, %c0_i32_0 : i32, i32, i32, i32
  }
  func.func @transform_2(%arg0: i32, %arg1: i32, %arg2: i32) -> (i32, i32, i32) {
    %c0_i32 = arith.constant 0 : i32
    %c0_i32_0 = arith.constant 0 : i32
    %c0_i32_1 = arith.constant 0 : i32
    %c0_i32_2 = arith.constant 0 : i32
    return %c0_i32, %c0_i32_0, %c0_i32_1 : i32, i32, i32
  }
  func.func @transform_3(%arg0: i32, %arg1: i32, %arg2: i32) -> (i32, i32) {
    %c0_i32 = arith.constant 0 : i32
    %c0_i32_0 = arith.constant 0 : i32
    %c0_i32_1 = arith.constant 0 : i32
    return %c0_i32, %c0_i32_0 : i32, i32
  }
  func.func @transform_4(%arg0: i32, %arg1: i32, %arg2: i32) -> (i32, i32, i32, i32) {
    %c0_i32 = arith.constant 0 : i32
    %c0_i32_0 = arith.constant 0 : i32
    return %arg0, %arg1, %c0_i32, %arg2 : i32, i32, i32, i32
  }
}

</mosaic_0001>

<bundles_post_ra>
// kernel: tpu_custom_call.1
= control target key start
LH: loop header
LB: loop body
LE: loop exit
PB: predicated region body
PF: predicated region fallthrough
CT: control target
= control target key end

     0   :  { %9 = vsyncpa [#allocation4], 0  ;;  %s4382_s0 = inlined_call_operand.vmem [shape: bf16[2,18,18,4], index: 0, kind: input, shape index: {}]   ;;  %s4383_s1 = inlined_call_operand.vmem [shape: bf16[2,18,18,4], index: 1, kind: input, shape index: {}]   ;;  %s4384_s2 = inlined_call_operand.vmem [shape: bf16[3,12,128], index: 2, kind: input, shape index: {}]   ;;  %s4385_s3 = inlined_call_operand.vmem [shape: f32[1,128], index: 3, kind: input, shape index: {}]   ;;  %s4386_s4 = inlined_call_operand.hbm [shape: bf16[2,16,16,128], index: 4, kind: output, shape index: {}]  }
   0x1   :  { %11 = vsyncpa [#allocation4 + $0x1], 0  ;;  %s3673_s15 = smov 0   ;;  %s3675_s16 = smov 0  }
   0x2   :  { %s3677_s17 = smov 0   ;;  %s3679_s18 = smov 0  }
   0x3   :  { %s3681_s19 = smov 0   ;;  %s3683_s20 = smov 0  }
   0x4 LB: > { %s2706_s21 = sadd.s32 4294967295, %s3642_s20   ;;  %s2707_s22 = sadd.s32 4294967294, %s3642_s20   ;;  %s3642_s20 = sphi %s3683_s20, %s17_s20   ;;  %s3638_s19 = sphi %s3681_s19, %s4393_s19   ;;  %s3634_s18 = sphi %s3679_s18, %s4392_s18   ;;  %s3630_s17 = sphi %s3677_s17, %s4391_s17   ;;  %s3626_s16 = sphi %s3675_s16, %s4390_s16   ;;  %s3622_s15 = sphi %s3673_s15, %s4389_s15  }
   0x5   : > { %s36_s23 = sadd.s32 1, %s3638_s19  ;;  %s149_s24 = sadd.s32 1, %s3630_s17 }
   0x6   : > { %p38_p0 = scmp.ge.s32.totalorder %s36_s23, 2  ;;  %p159_p1 = scmp.ne.s32.totalorder %s3630_s17, %s3626_s16 }
   0x7   : > { %p160_p2 = scmp.eq.s32.totalorder %s2706_s21, 1  ;;  %p165_p3 = scmp.ne.s32.totalorder %s3626_s16, %s3622_s15 }
   0x8   : > { %s4395_s23 = smov (%p38_p0, %s36_s23), 0  ;;  %p166_p5 = scmp.eq.s32.totalorder %s2707_s22, 1 }
   0x9   : > { %p3713_p4 = por %p160_p2, %p159_p1  ;;  %s142_s26 = ssub.s32 %s3638_s19, %s4395_s23 }
   0xa   : > { %p2710_p6 = scmp.ge.s32.totalorder %s3642_s20, 1  ;;  %p147_p7 = scmp.eq.s32.totalorder %s142_s26, 0 }
   0xb   : > { %p3720_p8 = por %p166_p5, %p165_p3  ;;  %p232_p9 = scmp.lt.s32.totalorder %s3642_s20, 3 }
   0xc   : > { %s3726_s28 = scalar_select %p147_p7, %s3630_s17, %s149_s24  }
   0xd   : > { %p233_p10 = pnand %p2710_p6, %p232_p9 }
   0xe   : > { %p286_p11 = scmp.lt.s32.totalorder (!%p233_p10), %s3634_s18, 1  ;;  %vm662_vm0 = vsmask.f32 (!%p233_p10), 7424  ;;  %vm1150_vm1 = vcmask (!%p233_p10), 1046528   ;;  %s3644_s8 = smov (!%p233_p10), 8   ;;  %vm450_vm2 = vcmask (!%p233_p10), 31744  }
   0xf   : > { %236 = sbr.rel (%p233_p10) target bundleno = 556 (0x22c), region = 36  ;;  %s3645_s9 = smov (!%p233_p10), 4   ;;  %vm1399_vm3 = vcmask (!%p233_p10), 1045504   ;;  %vm903_vm4 = vcmask (!%p233_p10), 64544   ;;  %vm1247_vm5 = vcmask (!%p233_p10), 97344   ;;  %vm1350_vm6 = vcmask (!%p233_p10), 97280  }
  0x10   : > { %s277_s6 = sand.u32 (!%p233_p10), 1, %s3626_s16   ;;  %s3646_s22 = smov (!%p233_p10), [#allocation3]  }
  0x11   : > { %s3568_s24 = sshll.u32 (!%p233_p10), %s3646_s22, 4  ;;  %s3569_s24 = int_to_ptr.vmem [resolvable:$false] %s3568_s24 }
  0x12   : > { %s3570_s26 = scalar_lea.vmem (!%p233_p10), %s3569_s24, 4096 }
  0x16   : > { %s3730_s29 = scalar_select %p286_p11, %s3634_s18, 1 }
  0x18   : > { %s3282_s30 = smul.u32 216, %s3730_s29 }
  0x1a   : > { %s3738_s7 = scalar_lea.vmem %s4382_s0, %s3282_s30  ;;  %s3817_s10 = sadd.s32 192, %s3282_s30 }
  0x1b   : > { %v3343_v0 = vld [vmem:[%s3738_s7] sm:$0xff]   ;;  %v3344_v1 = vld [vmem:[%s3738_s7 + $0x8] ss:$0 sps:$4 sm:$0x11]   ;;  %v3347_v8 = vld [vmem:[%s3738_s7 + $0xc] sm:$0xff]   ;;  %s3863_s13 = scalar_lea.vmem %s4383_s1, %s3817_s10  ;;  %s2963_s10 = sshll.u32 %s3634_s18, 11 }
  0x1c   : > { %v3345_v2 = vld [vmem:[%s3738_s7] sm:$0xfe]   ;;  %v664_v3 = vshrl.u32 %v3343_v0, 16  ;;  %v666_v4 = vshll.u32 %v3343_v0, 16  ;;  %v671_v5 = vshll.u32 %v3344_v1, 16  ;;  %v3349_v12 = vld [vmem:[%s3738_s7 + $0x18] sm:$0xff]   ;;  %s4328_s14 = scalar_lea.hbm %s4386_s4, %s2963_s10 }
  0x1d   : > { %v3346_v6 = vld [vmem:[%s3738_s7 + $0x8] ss:$0 sps:$4 sm:$0x11]   ;;  %v1151_v7 = vrot.slane %v3345_v2, 1  ;;  %v676_v14 = vshrl.u32 %v3347_v8, 16  ;;  %v678_v15 = vshll.u32 %v3347_v8, 16 }
  0x1e   : > { %v668_v9 = vrot.slane %v666_v4, 1  ;;  %v673_v10 = vrot.slane %v671_v5, 1  ;;  %v1152_v11 = vrot.slane %v3346_v6, 1  ;;  %v3348_v13 = vld [vmem:[%s3738_s7 + $0x14] ss:$0 sps:$4 sm:$0x11]  }
  0x1f   : > { %v3355_v16 = vld [vmem:[%s3738_s7 + $0x24] sm:$0xff]   ;;  %v680_v19 = vrot.slane %v678_v15, 1  ;;  %v683_v20 = vshll.u32 %v3348_v13, 16  ;;  %v3350_v21 = vld [vmem:[%s3738_s7 + $0x20] ss:$0 sps:$4 sm:$0x11]  }
  0x20   : > { %v669_v17 = vor.u32 %v668_v9, %v664_v3  ;;  %v1153_v18 = vsel %vm1150_vm1, %v1151_v7, %v1152_v11  ;;  %v688_v22 = vshrl.u32 %v3349_v12, 16  ;;  %v690_v24 = vshll.u32 %v3349_v12, 16  ;;  %v3351_v29 = vld [vmem:[%s3738_s7 + $0xc] sm:$0xfe]   ;;  %v3353_v37 = vld [vmem:[%s3738_s7 + $0x18] sm:$0xfe]  }
  0x21   : > { %1199 = vrot.lane.b32.xlu1 %v1153_v18, %s3644_s8  ;;  %v700_v25 = vshrl.u32 %v3355_v16, 16  ;;  %v681_v26 = vor.u32 %v680_v19, %v676_v14  ;;  %v685_v27 = vrot.slane %v683_v20, 1  ;;  %v695_v28 = vshll.u32 %v3350_v21, 16  ;;  %v3352_v31 = vld [vmem:[%s3738_s7 + $0x14] ss:$0 sps:$4 sm:$0x11]  }
  0x22   : > { %v674_v23 = vsel %vm662_vm0, %v669_v17, %v673_v10  ;;  %v692_v30 = vrot.slane %v690_v24, 1  ;;  %v1154_v34 = vrot.slane %v3351_v29, 1  ;;  %v1155_v36 = vrot.slane %v3352_v31, 1  ;;  %v3354_v38 = vld [vmem:[%s3738_s7 + $0x20] ss:$0 sps:$4 sm:$0x11]  }
  0x23   : > { %855 = vrot.lane.b32.xlu0 %v674_v23, %s3645_s9  ;;  %v686_v32 = vsel %vm662_vm0, %v681_v26, %v685_v27  ;;  %v697_v33 = vrot.slane %v695_v28, 1  ;;  %v1157_v41 = vrot.slane %v3353_v37, 1  ;;  %v1158_v42 = vrot.slane %v3354_v38, 1  ;;  %v3356_v43 = vld [vmem:[%s3738_s7 + $0x2c] ss:$0 sps:$4 sm:$0x11]  }
  0x24   : > { %v693_v35 = vor.u32 %v692_v30, %v688_v22  ;;  %v1156_v40 = vsel %vm1150_vm1, %v1154_v34, %v1155_v36  ;;  %v3357_v44 = vld [vmem:[%s3738_s7 + $0x30] sm:$0xff]   ;;  %v702_v45 = vshll.u32 %v3355_v16, 16  ;;  %v3363_v46 = vld [vmem:[%s3738_s7 + $0x3c] sm:$0xff]   ;;  %v707_v48 = vshll.u32 %v3356_v43, 16  ;;  %v3359_v58 = vld [vmem:[%s3738_s7 + $0x24] sm:$0xfe]  }
  0x25   : > { %v1159_v47 = vsel %vm1150_vm1, %v1157_v41, %v1158_v42  ;;  %v3358_v49 = vld [vmem:[%s3738_s7 + $0x38] ss:$0 sps:$4 sm:$0x11]   ;;  %v712_v51 = vshrl.u32 %v3357_v44, 16  ;;  %v714_v52 = vshll.u32 %v3357_v44, 16  ;;  %v724_v53 = vshrl.u32 %v3363_v46, 16 }
  0x26   : > { %v698_v39 = vsel %vm662_vm0, %v693_v35, %v697_v33  ;;  %v704_v50 = vrot.slane %v702_v45, 1  ;;  %v709_v54 = vrot.slane %v707_v48, 1  ;;  %v719_v55 = vshll.u32 %v3358_v49, 16  ;;  %v3360_v59 = vld [vmem:[%s3738_s7 + $0x2c] ss:$0 sps:$4 sm:$0x11]  }
  0x27   : > { %857 = vrot.lane.b32.xlu0 %v686_v32, %s3645_s9  ;;  %859 = vrot.lane.b32.xlu1 %v698_v39, %s3645_s9  ;;  %v716_v57 = vrot.slane %v714_v52, 1  ;;  %v726_v61 = vshll.u32 %v3363_v46, 16  ;;  %v1160_v0 = vrot.slane %v3359_v58, 1  ;;  %v1161_v1 = vrot.slane %v3360_v59, 1  ;;  %v3361_v2 = vld [vmem:[%s3738_s7 + $0x30] sm:$0xfe]  }
  0x28   : > { %v705_v56 = vor.u32 %v704_v50, %v700_v25  ;;  %v721_v60 = vrot.slane %v719_v55, 1  ;;  %v3362_v3 = vld [vmem:[%s3738_s7 + $0x38] ss:$0 sps:$4 sm:$0x11]   ;;  %v1163_v7 = vrot.slane %v3361_v2, 1  ;;  %v3365_v8 = vld [vmem:[%s3738_s7 + $0x48] sm:$0xff]  }
  0x29   : > { %v717_v63 = vor.u32 %v716_v57, %v712_v51  ;;  %v728_v4 = vrot.slane %v726_v61, 1  ;;  %v1162_v6 = vsel %vm1150_vm1, %v1160_v0, %v1161_v1  ;;  %v1164_v9 = vrot.slane %v3362_v3, 1  ;;  %v3364_v10 = vld [vmem:[%s3738_s7 + $0x44] ss:$0 sps:$4 sm:$0x11]   ;;  %v3371_v18 = vld [vmem:[%s3738_s7 + $0x54] sm:$0xff]  }
  0x2a   : > { %v710_v62 = vsel %vm662_vm0, %v705_v56, %v709_v54  ;;  %v736_v11 = vshrl.u32 %v3365_v8, 16  ;;  %v738_v12 = vshll.u32 %v3365_v8, 16  ;;  %v731_v15 = vshll.u32 %v3364_v10, 16  ;;  %v3366_v16 = vld [vmem:[%s3738_s7 + $0x50] ss:$0 sps:$4 sm:$0x11]  }
  0x2b   : > { %1201 = vrot.lane.b32.xlu0 %v1156_v40, %s3644_s8  ;;  %1203 = vrot.lane.b32.xlu1 %v1159_v47, %s3644_s8  ;;  %v722_v5 = vsel %vm662_vm0, %v717_v63, %v721_v60  ;;  %v1165_v13 = vsel %vm1150_vm1, %v1163_v7, %v1164_v9  ;;  %v729_v14 = vor.u32 %v728_v4, %v724_v53  ;;  %v743_v20 = vshll.u32 %v3366_v16, 16  ;;  %v3367_v21 = vld [vmem:[%s3738_s7 + $0x3c] sm:$0xfe]   ;;  %v3368_v23 = vld [vmem:[%s3738_s7 + $0x44] ss:$0 sps:$4 sm:$0x11]  }
  0x2c   : > { %v740_v17 = vrot.slane %v738_v12, 1  ;;  %v733_v19 = vrot.slane %v731_v15, 1  ;;  %v748_v24 = vshrl.u32 %v3371_v18, 16  ;;  %v1166_v27 = vrot.slane %v3367_v21, 1  ;;  %v3369_v28 = vld [vmem:[%s3738_s7 + $0x48] sm:$0xfe]  }
  0x2d   : > { %v745_v26 = vrot.slane %v743_v20, 1  ;;  %v1167_v29 = vrot.slane %v3368_v23, 1  ;;  %v3370_v30 = vld [vmem:[%s3738_s7 + $0x50] ss:$0 sps:$4 sm:$0x11]   ;;  %v1169_v32 = vrot.slane %v3369_v28, 1 }
  0x2e   : > { %v741_v22 = vor.u32 %v740_v17, %v736_v11  ;;  %v734_v25 = vsel %vm662_vm0, %v729_v14, %v733_v19  ;;  %v750_v33 = vshll.u32 %v3371_v18, 16  ;;  %v1170_v35 = vrot.slane %v3370_v30, 1  ;;  %v3372_v36 = vld [vmem:[%s3738_s7 + $0x5c] ss:$0 sps:$4 sm:$0x11]   ;;  %v3373_v38 = vld [vmem:[%s3738_s7 + $0x60] sm:$0xff]  }
  0x2f   : > { %861 = vrot.lane.b32.xlu0 %v710_v62, %s3645_s9  ;;  %863 = vrot.lane.b32.xlu1 %v722_v5, %s3645_s9  ;;  %v1168_v34 = vsel %vm1150_vm1, %v1166_v27, %v1167_v29  ;;  %v755_v40 = vshll.u32 %v3372_v36, 16  ;;  %v3374_v41 = vld [vmem:[%s3738_s7 + $0x68] ss:$0 sps:$4 sm:$0x11]   ;;  %v760_v43 = vshrl.u32 %v3373_v38, 16  ;;  %v762_v44 = vshll.u32 %v3373_v38, 16 }
  0x30   : > { %v746_v31 = vsel %vm662_vm0, %v741_v22, %v745_v26  ;;  %v752_v37 = vrot.slane %v750_v33, 1  ;;  %v1171_v39 = vsel %vm1150_vm1, %v1169_v32, %v1170_v35  ;;  %v767_v46 = vshll.u32 %v3374_v41, 16  ;;  %v3375_v47 = vld [vmem:[%s3738_s7 + $0x54] sm:$0xfe]   ;;  %v3377_v53 = vld [vmem:[%s3738_s7 + $0x60] sm:$0xfe]  }
  0x31   : > { %v757_v45 = vrot.slane %v755_v40, 1  ;;  %v764_v48 = vrot.slane %v762_v44, 1  ;;  %v3376_v49 = vld [vmem:[%s3738_s7 + $0x5c] ss:$0 sps:$4 sm:$0x11]   ;;  %v1172_v52 = vrot.slane %v3375_v47, 1 }
  0x32   : > { %v753_v42 = vor.u32 %v752_v37, %v748_v24  ;;  %v769_v51 = vrot.slane %v767_v46, 1  ;;  %v1173_v55 = vrot.slane %v3376_v49, 1  ;;  %v3378_v56 = vld [vmem:[%s3738_s7 + $0x68] ss:$0 sps:$4 sm:$0x11]   ;;  %v1175_v57 = vrot.slane %v3377_v53, 1 }
  0x33   : > { %1205 = vrot.lane.b32.xlu0 %v1162_v6, %s3644_s8  ;;  %1207 = vrot.lane.b32.xlu1 %v1165_v13, %s3644_s8  ;;  %v765_v54 = vor.u32 %v764_v48, %v760_v43  ;;  %v3379_v58 = vld [vmem:[%s3738_s7 + $0x6c] sm:$0xff]   ;;  %v1176_v61 = vrot.slane %v3378_v56, 1  ;;  %v3380_v62 = vld [vmem:[%s3738_s7 + $0x74] ss:$0 sps:$4 sm:$0x11]   ;;  %s4335_s18 = scalar_lea.sflag [#allocation4], %s277_s6 }
  0x34   : > { %v758_v50 = vsel %vm662_vm0, %v753_v42, %v757_v45  ;;  %v1174_v60 = vsel %vm1150_vm1, %v1172_v52, %v1173_v55  ;;  %v772_v63 = vshrl.u32 %v3379_v58, 16  ;;  %v774_v0 = vshll.u32 %v3379_v58, 16  ;;  %v3381_v3 = vld [vmem:[%s3738_s7 + $0x78] sm:$0xff]   ;;  %v3382_v4 = vld [vmem:[%s3738_s7 + $0x80] ss:$0 sps:$4 sm:$0x11]  }
  0x35   : > { %v770_v59 = vsel %vm662_vm0, %v765_v54, %v769_v51  ;;  %v1177_v1 = vsel %vm1150_vm1, %v1175_v57, %v1176_v61  ;;  %v779_v2 = vshll.u32 %v3380_v62, 16  ;;  %v3387_v6 = vld [vmem:[%s3738_s7 + $0x84] sm:$0xff]   ;;  %v784_v8 = vshrl.u32 %v3381_v3, 16  ;;  %v3389_v11 = vld [vmem:[%s3738_s7 + $0x90] sm:$0xff]   ;;  %v3385_v21 = vld [vmem:[%s3738_s7 + $0x78] sm:$0xfe]  }
  0x36   : > { %v776_v5 = vrot.slane %v774_v0, 1  ;;  %v786_v9 = vshll.u32 %v3381_v3, 16  ;;  %v791_v10 = vshll.u32 %v3382_v4, 16  ;;  %v3383_v13 = vld [vmem:[%s3738_s7 + $0x6c] sm:$0xfe]   ;;  %v796_v15 = vshrl.u32 %v3387_v6, 16 }
  0x37   : > { %865 = vrot.lane.b32.xlu0 %v734_v25, %s3645_s9  ;;  %867 = vrot.lane.b32.xlu1 %v746_v31, %s3645_s9  ;;  %v781_v7 = vrot.slane %v779_v2, 1  ;;  %v3384_v14 = vld [vmem:[%s3738_s7 + $0x74] ss:$0 sps:$4 sm:$0x11]   ;;  %v1178_v19 = vrot.slane %v3383_v13, 1  ;;  %v798_v24 = vshll.u32 %v3387_v6, 16 }
  0x38   : > { %v777_v12 = vor.u32 %v776_v5, %v772_v63  ;;  %v788_v16 = vrot.slane %v786_v9, 1  ;;  %v793_v17 = vrot.slane %v791_v10, 1  ;;  %v1179_v20 = vrot.slane %v3384_v14, 1  ;;  %v3386_v23 = vld [vmem:[%s3738_s7 + $0x80] ss:$0 sps:$4 sm:$0x11]  }
  0x39   : > { %v1181_v26 = vrot.slane %v3385_v21, 1  ;;  %v808_v27 = vshrl.u32 %v3389_v11, 16  ;;  %v1182_v29 = vrot.slane %v3386_v23, 1  ;;  %v3388_v30 = vld [vmem:[%s3738_s7 + $0x8c] ss:$0 sps:$4 sm:$0x11]  }
  0x3a   : > { %v782_v18 = vsel %vm662_vm0, %v777_v12, %v781_v7  ;;  %v789_v22 = vor.u32 %v788_v16, %v784_v8  ;;  %v1180_v25 = vsel %vm1150_vm1, %v1178_v19, %v1179_v20  ;;  %v800_v31 = vrot.slane %v798_v24, 1  ;;  %v3390_v36 = vld [vmem:[%s3738_s7 + $0x98] ss:$0 sps:$4 sm:$0x11]   ;;  %v3395_v38 = vld [vmem:[%s3738_s7 + $0x9c] sm:$0xff]   ;;  %v3397_v58 = vld [vmem:[%s3738_s7 + $0xa8] sm:$0xff]  }
  0x3b   : > { %1209 = vrot.lane.b32.xlu0 %v1168_v34, %s3644_s8  ;;  %1211 = vrot.lane.b32.xlu1 %v1171_v39, %s3644_s8  ;;  %v810_v32 = vshll.u32 %v3389_v11, 16  ;;  %v1183_v33 = vsel %vm1150_vm1, %v1181_v26, %v1182_v29  ;;  %v803_v35 = vshll.u32 %v3388_v30, 16  ;;  %v815_v41 = vshll.u32 %v3390_v36, 16  ;;  %v3391_v42 = vld [vmem:[%s3738_s7 + $0x84] sm:$0xfe]   ;;  %v3403_v14 = vld [vmem:[%s3738_s7 + $0xb4] sm:$0xff]  }
  0x3c   : > { %v794_v28 = vsel %vm662_vm0, %v789_v22, %v793_v17  ;;  %v801_v34 = vor.u32 %v800_v31, %v796_v15  ;;  %v3392_v43 = vld [vmem:[%s3738_s7 + $0x8c] ss:$0 sps:$4 sm:$0x11]   ;;  %v820_v44 = vshrl.u32 %v3395_v38, 16  ;;  %v1184_v47 = vrot.slane %v3391_v42, 1  ;;  %v3405_v23 = vld [vmem:[%s3863_s13] sm:$0xff]  }
  0x3d   : > { %v812_v37 = vrot.slane %v810_v32, 1  ;;  %v805_v39 = vrot.slane %v803_v35, 1  ;;  %v817_v46 = vrot.slane %v815_v41, 1  ;;  %v3393_v48 = vld [vmem:[%s3738_s7 + $0x90] sm:$0xfe]   ;;  %v1185_v49 = vrot.slane %v3392_v43, 1 }
  0x3e   : > { %v1187_v52 = vrot.slane %v3393_v48, 1  ;;  %v822_v53 = vshll.u32 %v3395_v38, 16  ;;  %v3396_v56 = vld [vmem:[%s3738_s7 + $0xa4] ss:$0 sps:$4 sm:$0x11]   ;;  %v832_v63 = vshrl.u32 %v3397_v58, 16 }
  0x3f   : > { %869 = vrot.lane.b32.xlu0 %v758_v50, %s3645_s9  ;;  %871 = vrot.lane.b32.xlu1 %v770_v59, %s3645_s9  ;;  %v813_v40 = vor.u32 %v812_v37, %v808_v27  ;;  %v806_v45 = vsel %vm662_vm0, %v801_v34, %v805_v39  ;;  %v3394_v50 = vld [vmem:[%s3738_s7 + $0x98] ss:$0 sps:$4 sm:$0x11]   ;;  %v1186_v54 = vsel %vm1150_vm1, %v1184_v47, %v1185_v49  ;;  %v3398_v61 = vld [vmem:[%s3738_s7 + $0xb0] ss:$0 sps:$4 sm:$0x11]  }
  0x40   : > { %v1188_v55 = vrot.slane %v3394_v50, 1  ;;  %v824_v57 = vrot.slane %v822_v53, 1  ;;  %v834_v0 = vshll.u32 %v3397_v58, 16  ;;  %v839_v2 = vshll.u32 %v3398_v61, 16  ;;  %v3399_v3 = vld [vmem:[%s3738_s7 + $0x9c] sm:$0xfe]  }
  0x41   : > { %v818_v51 = vsel %vm662_vm0, %v813_v40, %v817_v46  ;;  %v3400_v5 = vld [vmem:[%s3738_s7 + $0xa4] ss:$0 sps:$4 sm:$0x11]   ;;  %v1190_v8 = vrot.slane %v3399_v3, 1  ;;  %v3401_v9 = vld [vmem:[%s3738_s7 + $0xa8] sm:$0xfe]  }
  0x42   : > { %v1189_v59 = vsel %vm1150_vm1, %v1187_v52, %v1188_v55  ;;  %v825_v62 = vor.u32 %v824_v57, %v820_v44  ;;  %v836_v4 = vrot.slane %v834_v0, 1  ;;  %v841_v7 = vrot.slane %v839_v2, 1  ;;  %v3402_v12 = vld [vmem:[%s3738_s7 + $0xb0] ss:$0 sps:$4 sm:$0x11]   ;;  %v3415_v27 = vld [vmem:[%s3738_s7] sm:$0xff]  }
  0x43   : > { %1213 = vrot.lane.b32.xlu0 %v1174_v60, %s3644_s8  ;;  %1215 = vrot.lane.b32.xlu1 %v1177_v1, %s3644_s8  ;;  %v827_v60 = vshll.u32 %v3396_v56, 16  ;;  %v1191_v11 = vrot.slane %v3400_v5, 1  ;;  %v1193_v13 = vrot.slane %v3401_v9, 1  ;;  %v1194_v17 = vrot.slane %v3402_v12, 1  ;;  %451 = vst.msk [vmem:[#allocation2] sm:$0xff] %vm450_vm2, %v3415_v27  ;;  %v3416_v47 = vld [vmem:[%s3738_s7 + $0xc] sm:$0xff]  }
  0x44   : > { %v837_v10 = vor.u32 %v836_v4, %v832_v63  ;;  %v844_v19 = vshrl.u32 %v3403_v14, 16  ;;  %v846_v20 = vshll.u32 %v3403_v14, 16  ;;  %v3406_v24 = vld [vmem:[%s3863_s13 + $0x8] ss:$0 sps:$4 sm:$0x11]   ;;  %v943_v29 = vshrl.u32 %v3405_v23, 16 }
  0x45   : > { %v829_v1 = vrot.slane %v827_v60, 1  ;;  %v1192_v16 = vsel %vm1150_vm1, %v1190_v8, %v1191_v11  ;;  %v1195_v21 = vsel %vm1150_vm1, %v1193_v13, %v1194_v17  ;;  %v945_v30 = vshll.u32 %v3405_v23, 16  ;;  %v3408_v34 = vld [vmem:[%s3738_s7 + $0xbc] ss:$0 sps:$4 sm:$0x11]   ;;  %452 = vst.msk [vmem:[#allocation2 + $0x8] sm:$0xff] %vm450_vm2, %v3416_v47 }
  0x46   : > { %v842_v15 = vsel %vm662_vm0, %v837_v10, %v841_v7  ;;  %v848_v26 = vrot.slane %v846_v20, 1  ;;  %v950_v31 = vshll.u32 %v3406_v24, 16  ;;  %v1197_v40 = vrot.slane %v3408_v34, 1  ;;  %v3409_v41 = vld [vmem:[%s3863_s13] sm:$0xfe]   ;;  %v3417_v52 = vld [vmem:[%s3738_s7 + $0x18] sm:$0xff]  }
  0x47   : > { %873 = vrot.lane.b32.xlu0 %v782_v18, %s3645_s9  ;;  %875 = vrot.lane.b32.xlu1 %v794_v28, %s3645_s9  ;;  %v830_v6 = vsel %vm662_vm0, %v825_v62, %v829_v1  ;;  %v3404_v18 = vld [vmem:[%s3738_s7 + $0xbc] ss:$0 sps:$4 sm:$0x11]   ;;  %v947_v36 = vrot.slane %v945_v30, 1  ;;  %v1286_v46 = vrot.slane %v3409_v41, 1  ;;  %453 = vst.msk [vmem:[#allocation2 + $0x10] sm:$0xff] %vm450_vm2, %v3417_v52 }
  0x48   : > { %v851_v22 = vshll.u32 %v3404_v18, 16  ;;  %v849_v32 = vor.u32 %v848_v26, %v844_v19  ;;  %v952_v37 = vrot.slane %v950_v31, 1  ;;  %v3410_v43 = vld [vmem:[%s3863_s13 + $0x8] ss:$0 sps:$4 sm:$0x11]   ;;  %v3421_v2 = vld [vmem:[%s3738_s7 + $0x30] sm:$0xff]  }
  0x49   : > { %v948_v42 = vor.u32 %v947_v36, %v943_v29  ;;  %v1287_v49 = vrot.slane %v3410_v43, 1  ;;  %v3412_v50 = vld [vmem:[%s3863_s13 + $0x14] ss:$0 sps:$4 sm:$0x11]   ;;  %v3413_v56 = vld [vmem:[%s3863_s13 + $0xc] sm:$0xfe]  }
  0x4a   : > { %v853_v28 = vrot.slane %v851_v22, 1  ;;  %v962_v55 = vshll.u32 %v3412_v50, 16  ;;  %v3414_v57 = vld [vmem:[%s3863_s13 + $0x14] ss:$0 sps:$4 sm:$0x11]   ;;  %v3418_v63 = vld [vmem:[%s3738_s7 + $0x24] sm:$0xff]  }
  0x4b   : > { %1217 = vrot.lane.b32.xlu0 %v1180_v25, %s3644_s8  ;;  %1219 = vrot.lane.b32.xlu1 %v1183_v33, %s3644_s8  ;;  %v3411_v25 = vld [vmem:[%s3863_s13 + $0xc] sm:$0xff]   ;;  %v3407_v33 = vld [vmem:[%s3738_s7 + $0xb4] sm:$0xfe]   ;;  %v953_v48 = vsel %vm662_vm0, %v948_v42, %v952_v37  ;;  %v1288_v53 = vsel %vm1150_vm1, %v1286_v46, %v1287_v49  ;;  %v1290_v60 = vrot.slane %v3414_v57, 1  ;;  %454 = vst.msk [vmem:[#allocation2 + $0x18] sm:$0xff] %vm450_vm2, %v3418_v63  ;;  %455 = vst.msk [vmem:[#allocation2 + $0x20] sm:$0xff] %vm450_vm2, %v3421_v2 }
  0x4c   : > { %v955_v35 = vshrl.u32 %v3411_v25, 16  ;;  %v854_v38 = vsel %vm662_vm0, %v849_v32, %v853_v28  ;;  %v1196_v39 = vrot.slane %v3407_v33, 1  ;;  %v957_v44 = vshll.u32 %v3411_v25, 16  ;;  %v3419_v0 = vld [vmem:[%s4384_s2 + $0x8] sm:$0x3f]   ;;  %v3425_v8 = vld [vmem:[%s3738_s7 + $0x54] sm:$0xff]  }
  0x4d   : > { %v964_v58 = vrot.slane %v962_v55, 1  ;;  %v3420_v1 = vld [vmem:[%s4384_s2] sm:$0x3f]   ;;  %3278 = vmatprep.subr.msk.bf16.mxu1 %vm1399_vm3, %v3419_v0  ;;  %v1401_v3 = vsel %vm1399_vm3, %v3419_v0, 0  ;;  %v3422_v4 = vld [vmem:[%s4384_s2 + $0x10] sm:$0x3f]  }
  0x4e   : > { %3279 = vmatprep.subr.msk.bf16.mxu0 %vm1399_vm3, %v3420_v1  ;;  %v3916_v5 = vsel %vm1399_vm3, %v3420_v1, 0  ;;  %3111 = vmatpush3.bf16.msra.mxu1 %v1401_v3  ;;  %v3424_v7 = vld [vmem:[%s3738_s7 + $0x48] sm:$0xff]   ;;  %v3426_v9 = vld [vmem:[%s3738_s7 + $0x60] sm:$0xff]   ;;  %458 = vst.msk [vmem:[#allocation2 + $0x38] sm:$0xff] %vm450_vm2, %v3425_v8  ;;  %v3428_v11 = vld [vmem:[%s3738_s7 + $0x78] sm:$0xff]   ;;  %v1857_v28 = vsel %vm1399_vm3, %v3422_v4, 0 }
  0x4f   : > { %877 = vrot.lane.b32.xlu0 %v806_v45, %s3645_s9  ;;  %879 = vrot.lane.b32.xlu1 %v818_v51, %s3645_s9  ;;  %v1198_v45 = vsel %vm1150_vm1, %v1196_v39, %v1197_v40  ;;  %v959_v51 = vrot.slane %v957_v44, 1  ;;  %457 = vst.msk [vmem:[#allocation2 + $0x30] sm:$0xff] %vm450_vm2, %v3424_v7  ;;  %v3427_v10 = vld [vmem:[%s3738_s7 + $0x6c] sm:$0xff]   ;;  %459 = vst.msk [vmem:[#allocation2 + $0x40] sm:$0xff] %vm450_vm2, %v3426_v9  ;;  %v3429_v12 = vld [vmem:[%s3738_s7 + $0x84] sm:$0xff]  }
  0x50   : > { %3145 = vmatpush3.bf16.msra.mxu0 %v3916_v5  ;;  %3280 = vmatprep.subr.msk.bf16.mxu1 %vm1399_vm3, %v3420_v1  ;;  %460 = vst.msk [vmem:[#allocation2 + $0x48] sm:$0xff] %vm450_vm2, %v3427_v10  ;;  %461 = vst.msk [vmem:[#allocation2 + $0x50] sm:$0xff] %vm450_vm2, %v3428_v11  ;;  %v3430_v13 = vld [vmem:[%s3738_s7 + $0x90] sm:$0xff]   ;;  %v3431_v14 = vld [vmem:[%s3738_s7 + $0x9c] sm:$0xff]  }
  0x51   : > { %3281 = vmatprep.subr.msk.bf16.mxu0 %vm1399_vm3, %v3422_v4  ;;  %462 = vst.msk [vmem:[#allocation2 + $0x58] sm:$0xff] %vm450_vm2, %v3429_v12  ;;  %463 = vst.msk [vmem:[#allocation2 + $0x60] sm:$0xff] %vm450_vm2, %v3430_v13  ;;  %v3434_v17 = vld [vmem:[%s3863_s13] sm:$0xff]   ;;  %v3435_v18 = vld [vmem:[%s3863_s13 + $0xc] sm:$0xff]  }
  0x52   : > { %464 = vst.msk [vmem:[#allocation2 + $0x68] sm:$0xff] %vm450_vm2, %v3431_v14  ;;  %484 = vst.msk [vmem:[#allocation2 + $0x80] sm:$0xff] %vm450_vm2, %v3434_v17 }
  0x53   : > { %1221 = vrot.lane.b32.xlu0 %v1186_v54, %s3644_s8  ;;  %1223 = vrot.lane.b32.xlu1 %v1189_v59, %s3644_s8  ;;  %v960_v54 = vor.u32 %v959_v51, %v955_v35  ;;  %v1289_v59 = vrot.slane %v3413_v56, 1  ;;  %485 = vst.msk [vmem:[#allocation2 + $0x88] sm:$0xff] %vm450_vm2, %v3435_v18 }
  0x55   : > { %v965_v61 = vsel %vm662_vm0, %v960_v54, %v964_v58  ;;  %v1291_v62 = vsel %vm1150_vm1, %v1289_v59, %v1290_v60 }
  0x57   : > { %881 = vrot.lane.b32.xlu0 %v830_v6, %s3645_s9  ;;  %883 = vrot.lane.b32.xlu1 %v842_v15, %s3645_s9  ;;  %v3423_v6 = vld [vmem:[%s3738_s7 + $0x3c] sm:$0xff]   ;;  %v3432_v15 = vld [vmem:[%s3738_s7 + $0xa8] sm:$0xff]  }
  0x58   : > { %456 = vst.msk [vmem:[#allocation2 + $0x28] sm:$0xff] %vm450_vm2, %v3423_v6  ;;  %465 = vst.msk [vmem:[#allocation2 + $0x70] sm:$0xff] %vm450_vm2, %v3432_v15 }
  0x5b   : > { %1225 = vrot.lane.b32.xlu0 %v1192_v16, %s3644_s8  ;;  %1227 = vrot.lane.b32.xlu1 %v1195_v21, %s3644_s8  ;;  %v3433_v16 = vld [vmem:[%s3738_s7 + $0xb4] sm:$0xff]   ;;  %s4129_s7 = sshll.u32 %s277_s6, 7 }
  0x5c   : > { %466 = vst.msk [vmem:[#allocation2 + $0x78] sm:$0xff] %vm450_vm2, %v3433_v16 }
  0x5f   : > { %885 = vrot.lane.b32.xlu0 %v854_v38, %s3645_s9  ;;  %966 = vrot.lane.b32.xlu1 %v953_v48, %s3645_s9 }
  0x63   : > { %1229 = vrot.lane.b32.xlu0 %v1198_v45, %s3644_s8  ;;  %1292 = vrot.lane.b32.xlu1 %v1288_v53, %s3644_s8 }
  0x67   : > { %968 = vrot.lane.b32.xlu0 %v965_v61, %s3645_s9  ;;  %1294 = vrot.lane.b32.xlu1 %v1291_v62, %s3644_s8  ;;  %s4149_s8 = scalar_lea.vmem [#allocation3], %s4129_s7 }
  0x68   : > { %s2590_s11 = sshll.u32 %s4149_s8, 4  ;;  %s4330_s11 = int_to_ptr.vmem [resolvable:$true] %s2590_s11 }
  0x69   : > { %s3564_s21 = scalar_lea.vmem %s4330_s11, 2048  ;;  %p3571_p1 = scmp.lt.s32.totalorder %s4330_s11, %s3569_s24 }
  0x6a   : > { %p3565_p12 = scmp.ne.s32.totalorder %s4330_s11, %s3564_s21  ;;  %p3572_p2 = scmp.lt.s32.totalorder %s3570_s26, %s3564_s21 }
  0x6c   : > { %p3566_p13 = pnand %p3565_p12, %p3713_p4  ;;  %p3573_p3 = por %p3572_p2, %p3571_p1 }
  0x6e   : > { %p3567_p0 = pneg %p3566_p13 }
  0x70   : > { %p3574_p5 = pnand %p3573_p3, %p3567_p0 }
  0x93   : > { %v1200_v19 = vpop.permute.xlu1 %1199 }
  0x95   : > { %v856_v20 = vpop.permute.xlu0 %855 }
  0x96   : > { %904 = vst.msk [vmem:[#allocation2] sm:$0xff] %vm903_vm4, %v856_v20 }
  0x97   : > { %1248 = vst.msk [vmem:[#allocation2] sm:$0xff] %vm1247_vm5, %v1200_v19 }
  0x99   : > { %v858_v21 = vpop.permute.xlu0 %857  ;;  %v860_v22 = vpop.permute.xlu1 %859 }
  0x9a   : > { %905 = vst.msk [vmem:[#allocation2 + $0x8] sm:$0xff] %vm903_vm4, %v858_v21  ;;  %906 = vst.msk [vmem:[#allocation2 + $0x10] sm:$0xff] %vm903_vm4, %v860_v22 }
  0x9d   : > { %v1202_v23 = vpop.permute.xlu0 %1201  ;;  %v1204_v25 = vpop.permute.xlu1 %1203 }
  0x9e   : > { %1249 = vst.msk [vmem:[#allocation2 + $0x8] sm:$0xff] %vm1247_vm5, %v1202_v23  ;;  %v1301_v24 = vld [vmem:[#allocation2] sm:$0xff]  ;;  %1250 = vst.msk [vmem:[#allocation2 + $0x10] sm:$0xff] %vm1247_vm5, %v1204_v25 }
  0x9f   : > { %3146 = vmatprep.mubr.msk.bf16.mxu0 %vm1350_vm6, %v1301_v24 }
  0xa1   : > { %v862_v26 = vpop.permute.xlu0 %861  ;;  %v864_v27 = vpop.permute.xlu1 %863 }
  0xa2   : > { %907 = vst.msk [vmem:[#allocation2 + $0x18] sm:$0xff] %vm903_vm4, %v862_v26  ;;  %908 = vst.msk [vmem:[#allocation2 + $0x20] sm:$0xff] %vm903_vm4, %v864_v27  ;;  %v4047_v27 = vld [vmem:[%s4385_s3] ss:$0 sm:$0xff] }
  0xa5   : > { %v1324_v29 = vld [vmem:[#allocation2 + $0x8] sm:$0xff]  ;;  %v1206_v30 = vpop.permute.xlu0 %1205  ;;  %v1325_v31 = vld [vmem:[#allocation2 + $0x10] sm:$0xff]  ;;  %v1208_v32 = vpop.permute.xlu1 %1207 }
  0xa6   : > { %3112 = vmatprep.mubr.msk.bf16.mxu1 %vm1350_vm6, %v1324_v29  ;;  %3147 = vmatmul.mubr.msk.bf16.vlgmr.msra.gmra.mrb[0].mxu0 %vm1350_vm6, %v1324_v29  ;;  %1251 = vst.msk [vmem:[#allocation2 + $0x18] sm:$0xff] %vm1247_vm5, %v1206_v30  ;;  %1252 = vst.msk [vmem:[#allocation2 + $0x20] sm:$0xff] %vm1247_vm5, %v1208_v32 }
  0xa7   : > { %3179 = vmatpush3.bf16.msra.mxu0 %v1857_v28  ;;  %3113 = vmatmul.mubr.msk.bf16.vlgmr.msra.gmra.mrb[0].mxu1 %vm1350_vm6, %v1325_v31 }
  0xa8   : > { %3150 = vmatprep.mubr.msk.bf16.mxu0 %vm1350_vm6, %v1325_v31  ;;  %3213 = vmatpush3.bf16.msra.mxu1 %v3916_v5 }
  0xa9   : > { %v866_v33 = vpop.permute.xlu0 %865  ;;  %v868_v34 = vpop.permute.xlu1 %867 }
  0xaa   : > { %909 = vst.msk [vmem:[#allocation2 + $0x28] sm:$0xff] %vm903_vm4, %v866_v33  ;;  %910 = vst.msk [vmem:[#allocation2 + $0x30] sm:$0xff] %vm903_vm4, %v868_v34 }
  0xad   : > { %v1326_v35 = vld [vmem:[#allocation2 + $0x18] sm:$0xff]  ;;  %v1210_v36 = vpop.permute.xlu0 %1209  ;;  %v1327_v37 = vld [vmem:[#allocation2 + $0x20] sm:$0xff]  ;;  %v1212_v38 = vpop.permute.xlu1 %1211 }
  0xae   : > { %3116 = vmatprep.mubr.msk.bf16.mxu1 %vm1350_vm6, %v1326_v35  ;;  %3151 = vmatmul.mubr.msk.bf16.gmra.mrb[4].mxu0 %vm1350_vm6, %v1326_v35  ;;  %1253 = vst.msk [vmem:[#allocation2 + $0x28] sm:$0xff] %vm1247_vm5, %v1210_v36  ;;  %1254 = vst.msk [vmem:[#allocation2 + $0x30] sm:$0xff] %vm1247_vm5, %v1212_v38 }
  0xaf   : > { %3117 = vmatmul.mubr.msk.bf16.gmra.mrb[4].mxu1 %vm1350_vm6, %v1327_v37  ;;  %3154 = vmatprep.mubr.msk.bf16.mxu0 %vm1350_vm6, %v1327_v37 }
  0xb1   : > { %v870_v39 = vpop.permute.xlu0 %869  ;;  %v872_v40 = vpop.permute.xlu1 %871 }
  0xb2   : > { %911 = vst.msk [vmem:[#allocation2 + $0x38] sm:$0xff] %vm903_vm4, %v870_v39  ;;  %912 = vst.msk [vmem:[#allocation2 + $0x40] sm:$0xff] %vm903_vm4, %v872_v40 }
  0xb5   : > { %v1328_v41 = vld [vmem:[#allocation2 + $0x28] sm:$0xff]  ;;  %v1214_v42 = vpop.permute.xlu0 %1213  ;;  %v1329_v43 = vld [vmem:[#allocation2 + $0x30] sm:$0xff]  ;;  %v1216_v44 = vpop.permute.xlu1 %1215 }
  0xb6   : > { %3120 = vmatprep.mubr.msk.bf16.mxu1 %vm1350_vm6, %v1328_v41  ;;  %3155 = vmatmul.mubr.msk.bf16.gmra.mrb[8].mxu0 %vm1350_vm6, %v1328_v41  ;;  %1255 = vst.msk [vmem:[#allocation2 + $0x38] sm:$0xff] %vm1247_vm5, %v1214_v42  ;;  %1256 = vst.msk [vmem:[#allocation2 + $0x40] sm:$0xff] %vm1247_vm5, %v1216_v44 }
  0xb7   : > { %3121 = vmatmul.mubr.msk.bf16.gmra.mrb[8].mxu1 %vm1350_vm6, %v1329_v43  ;;  %3158 = vmatprep.mubr.msk.bf16.mxu0 %vm1350_vm6, %v1329_v43 }
  0xb9   : > { %v874_v45 = vpop.permute.xlu0 %873  ;;  %v876_v47 = vpop.permute.xlu1 %875 }
  0xba   : > { %913 = vst.msk [vmem:[#allocation2 + $0x48] sm:$0xff] %vm903_vm4, %v874_v45  ;;  %914 = vst.msk [vmem:[#allocation2 + $0x50] sm:$0xff] %vm903_vm4, %v876_v47 }
  0xbd   : > { %v1330_v46 = vld [vmem:[#allocation2 + $0x38] sm:$0xff]  ;;  %v1218_v48 = vpop.permute.xlu0 %1217  ;;  %v1331_v49 = vld [vmem:[#allocation2 + $0x40] sm:$0xff]  ;;  %v1220_v50 = vpop.permute.xlu1 %1219 }
  0xbe   : > { %3124 = vmatprep.mubr.msk.bf16.mxu1 %vm1350_vm6, %v1330_v46  ;;  %3159 = vmatmul.mubr.msk.bf16.gmra.mrb[12].mxu0 %vm1350_vm6, %v1330_v46  ;;  %1257 = vst.msk [vmem:[#allocation2 + $0x48] sm:$0xff] %vm1247_vm5, %v1218_v48  ;;  %1258 = vst.msk [vmem:[#allocation2 + $0x50] sm:$0xff] %vm1247_vm5, %v1220_v50 }
  0xbf   : > { %3180 = vmatprep.mubr.msk.bf16.mxu0 %vm1350_vm6, %v1325_v31  ;;  %3125 = vmatmul.mubr.msk.bf16.gmra.mrb[12].mxu1 %vm1350_vm6, %v1331_v49 }
  0xc1   : > { %v878_v51 = vpop.permute.xlu0 %877  ;;  %v880_v52 = vpop.permute.xlu1 %879 }
  0xc2   : > { %915 = vst.msk [vmem:[#allocation2 + $0x58] sm:$0xff] %vm903_vm4, %v878_v51  ;;  %916 = vst.msk [vmem:[#allocation2 + $0x60] sm:$0xff] %vm903_vm4, %v880_v52 }
  0xc5   : > { %v1332_v53 = vld [vmem:[#allocation2 + $0x48] sm:$0xff]  ;;  %v1222_v54 = vpop.permute.xlu0 %1221  ;;  %v1224_v55 = vpop.permute.xlu1 %1223  ;;  %v1333_v56 = vld [vmem:[#allocation2 + $0x50] sm:$0xff] }
  0xc6   : > { %3181 = vmatmul.mubr.msk.bf16.vlgmr.msra.gmra.mrb[0].mxu0 %vm1350_vm6, %v1326_v35  ;;  %3128 = vmatprep.mubr.msk.bf16.mxu1 %vm1350_vm6, %v1332_v53  ;;  %1259 = vst.msk [vmem:[#allocation2 + $0x58] sm:$0xff] %vm1247_vm5, %v1222_v54  ;;  %1260 = vst.msk [vmem:[#allocation2 + $0x60] sm:$0xff] %vm1247_vm5, %v1224_v55 }
  0xc7   : > { %3184 = vmatprep.mubr.msk.bf16.mxu0 %vm1350_vm6, %v1327_v37  ;;  %3129 = vmatmul.mubr.msk.bf16.gmra.mrb[16].mxu1 %vm1350_vm6, %v1333_v56 }
  0xc9   : > { %v882_v57 = vpop.permute.xlu0 %881  ;;  %v884_v58 = vpop.permute.xlu1 %883 }
  0xca   : > { %917 = vst.msk [vmem:[#allocation2 + $0x68] sm:$0xff] %vm903_vm4, %v882_v57  ;;  %918 = vst.msk [vmem:[#allocation2 + $0x70] sm:$0xff] %vm903_vm4, %v884_v58 }
  0xcd   : > { %v1334_v59 = vld [vmem:[#allocation2 + $0x58] sm:$0xff]  ;;  %v1226_v60 = vpop.permute.xlu0 %1225  ;;  %v1335_v61 = vld [vmem:[#allocation2 + $0x60] sm:$0xff]  ;;  %v1228_v62 = vpop.permute.xlu1 %1227 }
  0xce   : > { %3185 = vmatmul.mubr.msk.bf16.gmra.mrb[4].mxu0 %vm1350_vm6, %v1328_v41  ;;  %3132 = vmatprep.mubr.msk.bf16.mxu1 %vm1350_vm6, %v1334_v59  ;;  %1261 = vst.msk [vmem:[#allocation2 + $0x68] sm:$0xff] %vm1247_vm5, %v1226_v60  ;;  %1262 = vst.msk [vmem:[#allocation2 + $0x70] sm:$0xff] %vm1247_vm5, %v1228_v62 }
  0xcf   : > { %3188 = vmatprep.mubr.msk.bf16.mxu0 %vm1350_vm6, %v1329_v43  ;;  %3133 = vmatmul.mubr.msk.bf16.gmra.mrb[20].mxu1 %vm1350_vm6, %v1335_v61 }
  0xd1   : > { %v886_v63 = vpop.permute.xlu0 %885  ;;  %v967_v1 = vpop.permute.xlu1 %966 }
  0xd2   : > { %919 = vst.msk [vmem:[#allocation2 + $0x78] sm:$0xff] %vm903_vm4, %v886_v63  ;;  %972 = vst.msk [vmem:[#allocation2 + $0x80] sm:$0xff] %vm903_vm4, %v967_v1 }
  0xd5   : > { %v1336_v0 = vld [vmem:[#allocation2 + $0x68] sm:$0xff]  ;;  %v1230_v2 = vpop.permute.xlu0 %1229  ;;  %v1337_v3 = vld [vmem:[#allocation2 + $0x70] sm:$0xff]  ;;  %v1293_v4 = vpop.permute.xlu1 %1292 }
  0xd6   : > { %3189 = vmatmul.mubr.msk.bf16.gmra.mrb[8].mxu0 %vm1350_vm6, %v1330_v46  ;;  %3136 = vmatprep.mubr.msk.bf16.mxu1 %vm1350_vm6, %v1336_v0  ;;  %1263 = vst.msk [vmem:[#allocation2 + $0x78] sm:$0xff] %vm1247_vm5, %v1230_v2  ;;  %1298 = vst.msk [vmem:[#allocation2 + $0x80] sm:$0xff] %vm1247_vm5, %v1293_v4 }
  0xd7   : > { %3192 = vmatprep.mubr.msk.bf16.mxu0 %vm1350_vm6, %v1331_v49  ;;  %3137 = vmatmul.mubr.msk.bf16.gmra.mrb[24].mxu1 %vm1350_vm6, %v1337_v3 }
  0xd9   : > { %v969_v5 = vpop.permute.xlu0 %968  ;;  %v1295_v6 = vpop.permute.xlu1 %1294 }
  0xda   : > { %973 = vst.msk [vmem:[#allocation2 + $0x88] sm:$0xff] %vm903_vm4, %v969_v5 }
  0xdb   : > { %1299 = vst.msk [vmem:[#allocation2 + $0x88] sm:$0xff] %vm1247_vm5, %v1295_v6 }
  0xdd   : > { %v1338_v7 = vld [vmem:[#allocation2 + $0x78] sm:$0xff]  ;;  %v1339_v8 = vld [vmem:[#allocation2 + $0x80] sm:$0xff] }
  0xde   : > { %3193 = vmatmul.mubr.msk.bf16.gmra.mrb[12].mxu0 %vm1350_vm6, %v1332_v53  ;;  %3140 = vmatprep.mubr.msk.bf16.mxu1 %vm1350_vm6, %v1338_v7 }
  0xdf   : > { %3196 = vmatprep.mubr.msk.bf16.mxu0 %vm1350_vm6, %v1333_v56  ;;  %3141 = vmatmul.mubr.msk.bf16.gmra.mrb[28].mxu1 %vm1350_vm6, %v1339_v8 }
  0xe0   : > { %3162 = vmatprep.mubr.msk.bf16.mxu1 %vm1350_vm6, %v1331_v49 }
  0xe2   : > { %v1797_v9 = vld [vmem:[#allocation2 + $0x88] sm:$0xff] }
  0xe6   : > { %3197 = vmatmul.mubr.msk.bf16.gmra.mrb[16].mxu0 %vm1350_vm6, %v1334_v59 }
  0xe7   : > { %3200 = vmatprep.mubr.msk.bf16.mxu0 %vm1350_vm6, %v1335_v61  ;;  %3163 = vmatmul.mubr.msk.bf16.vlgmr.msra.gmra.mrb[16].mxu1 %vm1350_vm6, %v1332_v53 }
  0xe8   : > { %3166 = vmatprep.mubr.msk.bf16.mxu1 %vm1350_vm6, %v1333_v56 }
  0xee   : > { %3201 = vmatmul.mubr.msk.bf16.gmra.mrb[20].mxu0 %vm1350_vm6, %v1336_v0 }
  0xef   : > { %3204 = vmatprep.mubr.msk.bf16.mxu0 %vm1350_vm6, %v1337_v3  ;;  %3167 = vmatmul.mubr.msk.bf16.gmra.mrb[20].mxu1 %vm1350_vm6, %v1334_v59 }
  0xf0   : > { %3170 = vmatprep.mubr.msk.bf16.mxu1 %vm1350_vm6, %v1335_v61 }
  0xf6   : > { %3205 = vmatmul.mubr.msk.bf16.gmra.mrb[24].mxu0 %vm1350_vm6, %v1338_v7 }
  0xf7   : > { %3208 = vmatprep.mubr.msk.bf16.mxu0 %vm1350_vm6, %v1339_v8  ;;  %3171 = vmatmul.mubr.msk.bf16.gmra.mrb[24].mxu1 %vm1350_vm6, %v1336_v0 }
  0xf8   : > { %3174 = vmatprep.mubr.msk.bf16.mxu1 %vm1350_vm6, %v1337_v3 }
  0xfe   : > { %3209 = vmatmul.mubr.msk.bf16.gmra.mrb[28].mxu0 %vm1350_vm6, %v1797_v9 }
  0xff   : > { %3175 = vmatmul.mubr.msk.bf16.gmra.mrb[28].mxu1 %vm1350_vm6, %v1338_v7 }
 0x17a   : > { %v3114_v10 = vpop.f32.mrb[0].mxu1 }
 0x17b   : > { %v1437_v11 = vpop.f32.mrb[1].mxu1 }
 0x17c   : > { %v3115_v12 = vpop.f32.mrb[2].mxu1 }
 0x17d   : > { %v1440_v13 = vpop.f32.mrb[3].mxu1 }
 0x182   : > { %v3118_v14 = vpop.f32.mrb[4].mxu1 }
 0x183   : > { %v1453_v15 = vpop.f32.mrb[5].mxu1 }
 0x184   : > { %v3119_v16 = vpop.f32.mrb[6].mxu1 }
 0x185   : > { %v1456_v17 = vpop.f32.mrb[7].mxu1 }
 0x18a   : > { %v3122_v18 = vpop.f32.mrb[8].mxu1 }
 0x18b   : > { %v1469_v19 = vpop.f32.mrb[9].mxu1 }
 0x18c   : > { %v3123_v20 = vpop.f32.mrb[10].mxu1 }
 0x18d   : > { %v4034_v21 = vpop.f32.mrb[11].mxu1 }
 0x192   : > { %v4036_v22 = vpop.f32.mrb[12].mxu1 }
 0x193   : > { %v4038_v23 = vpop.f32.mrb[13].mxu1 }
 0x194   : > { %v4040_v24 = vpop.f32.mrb[14].mxu1 }
 0x195   : > { %v4042_v25 = vpop.f32.mrb[15].mxu1 }
 0x199   : > { %v3182_v26 = vpop.f32.mrb[0].mxu0 }
 0x19a   : > { %v3214_v28 = vadd.f32 %v3182_v26, %v3114_v10  ;;  %v1893_v29 = vpop.f32.mrb[1].mxu0 }
 0x19b   : > { %v3215_v30 = vadd.f32 %v1893_v29, %v1437_v11  ;;  %v3183_v31 = vpop.f32.mrb[2].mxu0 }
 0x19c   : > { %v4050_v32 = vadd.f32 %v3214_v28, %v4047_v27  ;;  %v3216_v33 = vadd.f32 %v3183_v31, %v3115_v12  ;;  %v1896_v34 = vpop.f32.mrb[3].mxu0 }
 0x19d   : > { %v4053_v35 = vadd.f32 %v3215_v30, %v4047_v27  ;;  %v3217_v36 = vadd.f32 %v1896_v34, %v1440_v13 }
 0x19e   : > { %v2094_v37 = vmin.f32 %v4050_v32, 20.0  ;;  %v4057_v38 = vadd.f32 %v3216_v33, %v4047_v27 }
 0x19f   : > { %v2092_v39 = vmin.f32 %v4053_v35, 20.0  ;;  %v4061_v40 = vadd.f32 %v3217_v36, %v4047_v27 }
 0x1a0   : > { %v2128_v41 = vmul.f32 1.442695, %v2094_v37  ;;  %v2095_v42 = vmin.f32 %v4057_v38, 20.0 }
 0x1a1   : > { %v2124_v43 = vmul.f32 1.442695, %v2092_v39  ;;  %v2093_v44 = vmin.f32 %v4061_v40, 20.0  ;;  %v3186_v45 = vpop.f32.mrb[4].mxu0 }
 0x1a2   : > { %3436 = vpow2.f32 %v2128_v41  ;;  %v2130_v46 = vmul.f32 1.442695, %v2095_v42  ;;  %v3218_v47 = vadd.f32 %v3186_v45, %v3118_v14  ;;  %v1909_v48 = vpop.f32.mrb[5].mxu0 }
 0x1a3   : > { %3438 = vpow2.f32 %v2124_v43  ;;  %v2126_v49 = vmul.f32 1.442695, %v2093_v44  ;;  %v3219_v50 = vadd.f32 %v1909_v48, %v1453_v15  ;;  %v3187_v51 = vpop.f32.mrb[6].mxu0 }
 0x1a4   : > { %3440 = vpow2.f32 %v2130_v46  ;;  %v4066_v52 = vadd.f32 %v3218_v47, %v4047_v27  ;;  %v3220_v53 = vadd.f32 %v3187_v51, %v3119_v16  ;;  %v1912_v54 = vpop.f32.mrb[7].mxu0 }
 0x1a5   : > { %3442 = vpow2.f32 %v2126_v49  ;;  %v4069_v55 = vadd.f32 %v3219_v50, %v4047_v27  ;;  %v3221_v56 = vadd.f32 %v1912_v54, %v1456_v17 }
 0x1a6   : > { %v2098_v57 = vmin.f32 %v4066_v52, 20.0  ;;  %v4073_v58 = vadd.f32 %v3220_v53, %v4047_v27 }
 0x1a7   : > { %v2096_v59 = vmin.f32 %v4069_v55, 20.0  ;;  %v4077_v60 = vadd.f32 %v3221_v56, %v4047_v27 }
 0x1a8   : > { %v2136_v61 = vmul.f32 1.442695, %v2098_v57  ;;  %v2099_v62 = vmin.f32 %v4073_v58, 20.0 }
 0x1a9   : > { %v2132_v63 = vmul.f32 1.442695, %v2096_v59  ;;  %v2097_v0 = vmin.f32 %v4077_v60, 20.0  ;;  %v3190_v1 = vpop.f32.mrb[8].mxu0 }
 0x1aa   : > { %3444 = vpow2.f32 %v2136_v61  ;;  %v2138_v2 = vmul.f32 1.442695, %v2099_v62  ;;  %v3222_v3 = vadd.f32 %v3190_v1, %v3122_v18  ;;  %v1925_v4 = vpop.f32.mrb[9].mxu0 }
 0x1ab   : > { %3446 = vpow2.f32 %v2132_v63  ;;  %v2134_v5 = vmul.f32 1.442695, %v2097_v0  ;;  %v3223_v6 = vadd.f32 %v1925_v4, %v1469_v19  ;;  %v3191_v7 = vpop.f32.mrb[10].mxu0 }
 0x1ac   : > { %v3437_v8 = vpop.eup %3436  ;;  %3448 = vpow2.f32 %v2138_v2  ;;  %v4082_v9 = vadd.f32 %v3222_v3, %v4047_v27  ;;  %v3224_v10 = vadd.f32 %v3191_v7, %v3123_v20  ;;  %v1928_v11 = vpop.f32.mrb[11].mxu0 }
 0x1ad   : > { %v3439_v12 = vpop.eup %3438  ;;  %v2190_v13 = vadd.f32 1.0, %v3437_v8  ;;  %3450 = vpow2.f32 %v2134_v5  ;;  %v4085_v14 = vadd.f32 %v3223_v6, %v4047_v27  ;;  %v3225_v15 = vadd.f32 %v1928_v11, %v4034_v21 }
 0x1ae   : > { %v3441_v16 = vpop.eup %3440  ;;  %v2188_v17 = vadd.f32 1.0, %v3439_v12  ;;  %v2102_v18 = vmin.f32 %v4082_v9, 20.0  ;;  %v4090_v19 = vadd.f32 %v3224_v10, %v4047_v27 }
 0x1af   : > { %v3443_v26 = vpop.eup %3442  ;;  %v2222_v28 = vmul.f32 %v2190_v13, %v2190_v13  ;;  %v2191_v29 = vadd.f32 1.0, %v3441_v16  ;;  %v2100_v20 = vmin.f32 %v4085_v14, 20.0  ;;  %v4094_v30 = vadd.f32 %v3225_v15, %v4047_v27 }
 0x1b0   : > { %v2220_v31 = vmul.f32 %v2188_v17, %v2188_v17  ;;  %v2189_v33 = vadd.f32 1.0, %v3443_v26  ;;  %v2144_v34 = vmul.f32 1.442695, %v2102_v18  ;;  %v2103_v21 = vmin.f32 %v4090_v19, 20.0 }
 0x1b1   : > { %v2286_v36 = vadd.f32 1.0, %v2222_v28  ;;  %v2223_v37 = vmul.f32 %v2191_v29, %v2191_v29  ;;  %v3194_v39 = vpop.f32.mrb[12].mxu0  ;;  %v2140_v45 = vmul.f32 1.442695, %v2100_v20  ;;  %v2101_v50 = vmin.f32 %v4094_v30, 20.0 }
 0x1b2   : > { %v2284_v41 = vadd.f32 1.0, %v2220_v31  ;;  %v2221_v42 = vmul.f32 %v2189_v33, %v2189_v33  ;;  %3452 = vpow2.f32 %v2144_v34  ;;  %v1941_v43 = vpop.f32.mrb[13].mxu0  ;;  %v2146_v49 = vmul.f32 1.442695, %v2103_v21 }
 0x1b3   : > { %3454 = vrcp.f32 %v2286_v36  ;;  %v2287_v44 = vadd.f32 1.0, %v2223_v37  ;;  %v3195_v46 = vpop.f32.mrb[14].mxu0  ;;  %v3226_v56 = vadd.f32 %v3194_v39, %v4036_v22  ;;  %v3227_v57 = vadd.f32 %v1941_v43, %v4038_v23 }
 0x1b4   : > { %v3445_v47 = vpop.eup %3444  ;;  %3456 = vrcp.f32 %v2284_v41  ;;  %v2285_v48 = vadd.f32 1.0, %v2221_v42  ;;  %v1944_v51 = vpop.f32.mrb[15].mxu0  ;;  %v2142_v62 = vmul.f32 1.442695, %v2101_v50  ;;  %v3228_v63 = vadd.f32 %v3195_v46, %v4040_v24 }
 0x1b5   : > { %v3447_v53 = vpop.eup %3446  ;;  %3458 = vrcp.f32 %v2287_v44  ;;  %v2194_v54 = vadd.f32 1.0, %v3445_v47  ;;  %v4102_v3 = vadd.f32 %v3226_v56, %v4047_v27  ;;  %v4105_v22 = vadd.f32 %v3227_v57, %v4047_v27 }
 0x1b6   : > { %v3449_v59 = vpop.eup %3448  ;;  %3460 = vrcp.f32 %v2285_v48  ;;  %v2192_v61 = vadd.f32 1.0, %v3447_v53  ;;  %v2862_v23 = vadd.f32 -1.0, %v2222_v28  ;;  %v2860_v24 = vadd.f32 -1.0, %v2220_v31 }
 0x1b7   : > { %v3451_v0 = vpop.eup %3450  ;;  %v2226_v1 = vmul.f32 %v2194_v54, %v2194_v54  ;;  %v2195_v2 = vadd.f32 1.0, %v3449_v59  ;;  %3462 = vpow2.f32 %v2140_v45  ;;  %v2106_v12 = vmin.f32 %v4102_v3, 20.0 }
 0x1b8   : > { %v2224_v4 = vmul.f32 %v2192_v61, %v2192_v61  ;;  %v2193_v5 = vadd.f32 1.0, %v3451_v0  ;;  %3464 = vpow2.f32 %v2146_v49  ;;  %v2863_v15 = vadd.f32 -1.0, %v2223_v37 }
 0x1b9   : > { %v2290_v6 = vadd.f32 1.0, %v2226_v1  ;;  %v4107_v7 = vmul.f32 %v2195_v2, %v2195_v2  ;;  %3466 = vpow2.f32 %v2142_v62  ;;  %v3198_v8 = vpop.f32.mrb[16].mxu0  ;;  %v2104_v17 = vmin.f32 %v4105_v22, 20.0 }
 0x1ba   : > { %v2288_v10 = vadd.f32 1.0, %v2224_v4  ;;  %v4109_v11 = vmul.f32 %v2193_v5, %v2193_v5  ;;  %v4112_v13 = vpop.f32.mrb[17].mxu0  ;;  %v2861_v28 = vadd.f32 -1.0, %v2221_v42  ;;  %v2152_v20 = vmul.f32 1.442695, %v2106_v12 }
 0x1bb   : > { %3468 = vrcp.f32 %v2290_v6  ;;  %v2291_v16 = vadd.f32 1.0, %v4107_v7  ;;  %v4116_v18 = vpop.f32.mrb[18].mxu0  ;;  %v2148_v21 = vmul.f32 1.442695, %v2104_v17  ;;  %v4123_v36 = vadd.f32 %v3228_v63, %v4047_v27 }
 0x1bc   : > { %v3453_v26 = vpop.eup %3452  ;;  %3470 = vrcp.f32 %v2288_v10  ;;  %v2289_v29 = vadd.f32 1.0, %v4109_v11  ;;  %v4119_v31 = vpop.f32.mrb[19].mxu0  ;;  %v2866_v41 = vadd.f32 -1.0, %v2226_v1  ;;  %v3229_v42 = vadd.f32 %v1944_v51, %v4042_v25 }
 0x1bd   : > { %v3455_v33 = vpop.eup %3454  ;;  %3472 = vrcp.f32 %v2291_v16  ;;  %v2198_v34 = vadd.f32 1.0, %v3453_v26  ;;  %v2107_v46 = vmin.f32 %v4123_v36, 20.0  ;;  %v2864_v49 = vadd.f32 -1.0, %v2224_v4  ;;  %v3164_v1 = vpop.f32.mrb[16].mxu1 }
 0x1be   : > { %v3457_v37 = vpop.eup %3456  ;;  %v2350_v39 = vmul.f32 %v3455_v33, %v2862_v23  ;;  %3474 = vrcp.f32 %v2289_v29  ;;  %v4132_v50 = vadd.f32 %v3229_v42, %v4047_v27  ;;  %v1718_v23 = vpop.f32.mrb[17].mxu1  ;;  %v2867_v26 = vadd.f32 -1.0, %v4107_v7 }
 0x1bf   : > { %v3459_v43 = vpop.eup %3458  ;;  %v2348_v44 = vmul.f32 %v3457_v37, %v2860_v24  ;;  %v2230_v45 = vmul.f32 %v2198_v34, %v2198_v34  ;;  %3476 = vpow2.f32 %v2152_v20  ;;  %v2154_v63 = vmul.f32 1.442695, %v2107_v46  ;;  %v3165_v12 = vpop.f32.mrb[18].mxu1 }
 0x1c0   : > { %v3461_v47 = vpop.eup %3460  ;;  %v2351_v48 = vmul.f32 %v3459_v43, %v2863_v15  ;;  %3478 = vpow2.f32 %v2148_v21  ;;  %v2382_v54 = vmul.f32 %v2350_v39, %v4050_v32  ;;  %v2105_v0 = vmin.f32 %v4132_v50, 20.0  ;;  %v1721_v29 = vpop.f32.mrb[19].mxu1 }
 0x1c1   : > { %v3463_v53 = vpop.eup %3462  ;;  %v2380_v25 = vmul.f32 %v2348_v44, %v4053_v35  ;;  %v2349_v51 = vmul.f32 %v3461_v47, %v2861_v28  ;;  %v2294_v56 = vadd.f32 1.0, %v2230_v45  ;;  %v4136_v57 = vpop.f32.mrb[20].mxu0  ;;  %v3230_v35 = vadd.f32 %v3198_v8, %v3164_v1 }
 0x1c2   : > { %v3465_v59 = vpop.eup %3464  ;;  %v2383_v61 = vmul.f32 %v2351_v48, %v4057_v38  ;;  %v2196_v62 = vadd.f32 1.0, %v3463_v53  ;;  %v4140_v2 = vpop.f32.mrb[21].mxu0  ;;  %v2865_v7 = vadd.f32 -1.0, %v4109_v11  ;;  %v2870_v47 = vadd.f32 -1.0, %v2230_v45 }
 0x1c3   : > { %v3467_v4 = vpop.eup %3466  ;;  %v2381_v5 = vmul.f32 %v2349_v51, %v4061_v40  ;;  %3480 = vrcp.f32 %v2294_v56  ;;  %v2199_v32 = vadd.f32 1.0, %v3465_v59  ;;  %v4143_v6 = vpop.f32.mrb[22].mxu0  ;;  %v2150_v40 = vmul.f32 1.442695, %v2105_v0 }
 0x1c4   : > { %v2972_v24 = vpack.c.bf16 %v2383_v61, %v2382_v54  ;;  %v2228_v10 = vmul.f32 %v2196_v62, %v2196_v62  ;;  %v2197_v38 = vadd.f32 1.0, %v3467_v4  ;;  %3482 = vpow2.f32 %v2154_v63  ;;  %v4145_v15 = vpop.f32.mrb[23].mxu0 }
 0x1c5   : > { %v3469_v16 = vpop.eup %3468  ;;  %v2967_v17 = vpack.c.bf16 %v2381_v5, %v2380_v25  ;;  %v2231_v28 = vmul.f32 %v2199_v32, %v2199_v32  ;;  %v4153_v21 = vadd.f32 %v3230_v35, %v4047_v27  ;;  %3484 = vpow2.f32 %v2150_v40 }
 0x1c6   : > { %v3471_v20 = vpop.eup %3470  ;;  %3044 = vst [vmem:[%s4149_s8 + $0x8] sm:$0xff] %v2972_v24   ;;  %v2354_v8 = vmul.f32 %v3469_v16, %v2866_v41  ;;  %v2292_v33 = vadd.f32 1.0, %v2228_v10  ;;  %v2229_v34 = vmul.f32 %v2197_v38, %v2197_v38  ;;  %v3231_v59 = vadd.f32 %v4112_v13, %v1718_v23 }
 0x1c7   : > { %v3473_v37 = vpop.eup %3472  ;;  %2968 = vst [vmem:[%s4149_s8] sm:$0xff] %v2967_v17   ;;  %v2352_v39 = vmul.f32 %v3471_v20, %v2864_v49  ;;  %v2295_v42 = vadd.f32 1.0, %v2231_v28  ;;  %v2110_v56 = vmin.f32 %v4153_v21, 20.0  ;;  %v3232_v62 = vadd.f32 %v4116_v18, %v3165_v12 }
 0x1c8   : > { %v3475_v43 = vpop.eup %3474  ;;  %v2386_v44 = vmul.f32 %v2354_v8, %v4066_v52  ;;  %v2355_v46 = vmul.f32 %v3473_v37, %v2867_v26  ;;  %3486 = vrcp.f32 %v2292_v33  ;;  %v2293_v54 = vadd.f32 1.0, %v2229_v34  ;;  %v3168_v52 = vpop.f32.mrb[20].mxu1 }
 0x1c9   : > { %v3477_v48 = vpop.eup %3476  ;;  %v2384_v41 = vmul.f32 %v2352_v39, %v4069_v55  ;;  %v2353_v53 = vmul.f32 %v3475_v43, %v2865_v7  ;;  %3488 = vrcp.f32 %v2295_v42  ;;  %v4159_v25 = vpop.f32.mrb[24].mxu0  ;;  %v2160_v4 = vmul.f32 1.442695, %v2110_v56 }
 0x1ca   : > { %v3479_v51 = vpop.eup %3478  ;;  %v2387_v49 = vmul.f32 %v2355_v46, %v4073_v58  ;;  %v2202_v11 = vadd.f32 1.0, %v3477_v48  ;;  %v4164_v61 = vpop.f32.mrb[25].mxu0  ;;  %3490 = vrcp.f32 %v2293_v54  ;;  %v4171_v5 = vadd.f32 %v3231_v59, %v4047_v27 }
 0x1cb   : > { %v2385_v45 = vmul.f32 %v2353_v53, %v4077_v60  ;;  %v2200_v55 = vadd.f32 1.0, %v3479_v51  ;;  %v1734_v63 = vpop.f32.mrb[21].mxu1  ;;  %v4168_v0 = vpop.f32.mrb[26].mxu0  ;;  %v4178_v18 = vadd.f32 %v3232_v62, %v4047_v27  ;;  %v3233_v24 = vadd.f32 %v4119_v31, %v1721_v29 }
 0x1cc   : > { %v2982_v1 = vpack.c.bf16 %v2387_v49, %v2386_v44  ;;  %v2234_v58 = vmul.f32 %v2202_v11, %v2202_v11  ;;  %v3169_v13 = vpop.f32.mrb[22].mxu1  ;;  %v4173_v32 = vpop.f32.mrb[27].mxu0  ;;  %v2868_v16 = vadd.f32 -1.0, %v2228_v10  ;;  %v2871_v17 = vadd.f32 -1.0, %v2231_v28 }
 0x1cd   : > { %v3481_v35 = vpop.eup %3480  ;;  %v2977_v60 = vpack.c.bf16 %v2385_v45, %v2384_v41  ;;  %v4175_v23 = vmul.f32 %v2200_v55, %v2200_v55  ;;  %v1737_v38 = vpop.f32.mrb[23].mxu1  ;;  %3492 = vpow2.f32 %v2160_v4  ;;  %v2869_v40 = vadd.f32 -1.0, %v2229_v34 }
 0x1ce   : > { %v3483_v12 = vpop.eup %3482  ;;  %3046 = vst [vmem:[%s4149_s8 + $0x18] sm:$0xff] %v2982_v1   ;;  %v2298_v26 = vadd.f32 1.0, %v2234_v58  ;;  %v2108_v33 = vmin.f32 %v4171_v5, 20.0  ;;  %v2358_v37 = vmul.f32 %v3481_v35, %v2870_v47  ;;  %v2111_v39 = vmin.f32 %v4178_v18, 20.0  ;;  %v3172_v48 = vpop.f32.mrb[24].mxu1 }
 0x1cf   : > { %3045 = vst [vmem:[%s4149_s8 + $0x10] sm:$0xff] %v2977_v60   ;;  %v2296_v20 = vadd.f32 1.0, %v4175_v23  ;;  %v2203_v8 = vadd.f32 1.0, %v3483_v12  ;;  %v4187_v31 = vadd.f32 %v3233_v24, %v4047_v27  ;;  %v3485_v29 = vpop.eup %3484  ;;  %v3234_v7 = vadd.f32 %v4136_v57, %v3168_v52  ;;  %v1750_v11 = vpop.f32.mrb[25].mxu1 }
 0x1d0   : > { %3494 = vrcp.f32 %v2298_v26  ;;  %v2156_v28 = vmul.f32 1.442695, %v2108_v33  ;;  %v2201_v43 = vadd.f32 1.0, %v3485_v29  ;;  %v2162_v44 = vmul.f32 1.442695, %v2111_v39  ;;  %v3173_v45 = vpop.f32.mrb[26].mxu1 }
 0x1d1   : > { %3496 = vrcp.f32 %v2296_v20  ;;  %v2235_v10 = vmul.f32 %v2203_v8, %v2203_v8  ;;  %v4190_v42 = vpop.f32.mrb[28].mxu0  ;;  %v2109_v46 = vmin.f32 %v4187_v31, 20.0  ;;  %v3235_v47 = vadd.f32 %v4140_v2, %v1734_v63 }
 0x1d2   : > { %v3487_v34 = vpop.eup %3486  ;;  %v4194_v41 = vpop.f32.mrb[29].mxu0  ;;  %v2874_v51 = vadd.f32 -1.0, %v2234_v58  ;;  %3498 = vpow2.f32 %v2156_v28  ;;  %v2233_v59 = vmul.f32 %v2201_v43, %v2201_v43  ;;  %v2390_v2 = vmul.f32 %v2358_v37, %v4082_v9 }
 0x1d3   : > { %v3489_v53 = vpop.eup %3488  ;;  %v2356_v54 = vmul.f32 %v3487_v34, %v2868_v16  ;;  %v2299_v49 = vadd.f32 1.0, %v2235_v10  ;;  %v4196_v56 = vpop.f32.mrb[30].mxu0  ;;  %3500 = vpow2.f32 %v2162_v44  ;;  %v2158_v52 = vmul.f32 1.442695, %v2109_v46 }
 0x1d4   : > { %v2359_v57 = vmul.f32 %v3489_v53, %v2871_v17  ;;  %v4198_v55 = vpop.f32.mrb[31].mxu0  ;;  %v3491_v62 = vpop.eup %3490  ;;  %v4202_v63 = vadd.f32 %v3234_v7, %v4047_v27  ;;  %v4205_v1 = vadd.f32 %v3235_v47, %v4047_v27  ;;  %v2297_v24 = vadd.f32 1.0, %v2233_v59 }
 0x1d5   : > { %3502 = vrcp.f32 %v2299_v49  ;;  %v4207_v58 = vpop.f32.mrb[27].mxu1  ;;  %v2388_v4 = vmul.f32 %v2356_v54, %v4085_v14  ;;  %v2357_v60 = vmul.f32 %v3491_v62, %v2869_v40  ;;  %v3236_v16 = vadd.f32 %v4143_v6, %v3169_v13 }
 0x1d6   : > { %v2391_v35 = vmul.f32 %v2359_v57, %v4090_v19  ;;  %3504 = vpow2.f32 %v2158_v52  ;;  %v2114_v12 = vmin.f32 %v4202_v63, 20.0  ;;  %v2112_v9 = vmin.f32 %v4205_v1, 20.0  ;;  %v4225_v13 = vpop.f32.mrb[28].mxu1 }
 0x1d7   : > { %v3493_v17 = vpop.eup %3492  ;;  %v2389_v20 = vmul.f32 %v2357_v60, %v4094_v30  ;;  %3506 = vrcp.f32 %v2297_v24  ;;  %v3237_v8 = vadd.f32 %v4145_v15, %v1737_v38  ;;  %v4217_v40 = vadd.f32 %v3236_v16, %v4047_v27  ;;  %v1766_v34 = vpop.f32.mrb[29].mxu1 }
 0x1d8   : > { %v2992_v26 = vpack.c.bf16 %v2391_v35, %v2390_v2  ;;  %v2206_v14 = vadd.f32 1.0, %v3493_v17  ;;  %v2168_v33 = vmul.f32 1.442695, %v2114_v12  ;;  %v2164_v19 = vmul.f32 1.442695, %v2112_v9 }
 0x1d9   : > { %v2987_v39 = vpack.c.bf16 %v2389_v20, %v2388_v4  ;;  %v4221_v29 = vadd.f32 %v3237_v8, %v4047_v27  ;;  %v3238_v6 = vadd.f32 %v4159_v25, %v3172_v48  ;;  %v3239_v30 = vadd.f32 %v4164_v61, %v1750_v11  ;;  %v3177_v61 = vpop.f32.mrb[30].mxu1 }
 0x1da   : > { %v3495_v37 = vpop.eup %3494  ;;  %3048 = vst [vmem:[%s4149_s8 + $0x28] sm:$0xff] %v2992_v26   ;;  %v2872_v38 = vadd.f32 -1.0, %v4175_v23  ;;  %v4228_v28 = vmul.f32 %v2206_v14, %v2206_v14  ;;  %3508 = vpow2.f32 %v2168_v33  ;;  %v2115_v7 = vmin.f32 %v4217_v40, 20.0  ;;  %v4237_v54 = vpop.f32.mrb[31].mxu1 }
 0x1db   : > { %v3497_v15 = vpop.eup %3496  ;;  %3047 = vst [vmem:[%s4149_s8 + $0x20] sm:$0xff] %v2987_v39   ;;  %v2875_v43 = vadd.f32 -1.0, %v2235_v10  ;;  %3510 = vpow2.f32 %v2164_v19  ;;  %v2113_v44 = vmin.f32 %v4221_v29, 20.0  ;;  %v4234_v25 = vadd.f32 %v3238_v6, %v4047_v27 }
 0x1dc   : > { %v3499_v46 = vpop.eup %3498  ;;  %v2362_v47 = vmul.f32 %v3495_v37, %v2874_v51  ;;  %v2873_v48 = vadd.f32 -1.0, %v2233_v59  ;;  %v2302_v23 = vadd.f32 1.0, %v4228_v28  ;;  %v2170_v53 = vmul.f32 1.442695, %v2115_v7 }
 0x1dd   : > { %v3501_v49 = vpop.eup %3500  ;;  %v2360_v11 = vmul.f32 %v3497_v15, %v2872_v38  ;;  %v2204_v57 = vadd.f32 1.0, %v3499_v46  ;;  %v2166_v52 = vmul.f32 1.442695, %v2113_v44  ;;  %v2118_v10 = vmin.f32 %v4234_v25, 20.0 }
 0x1de   : > { %3512 = vrcp.f32 %v2302_v23  ;;  %v2207_v2 = vadd.f32 1.0, %v3501_v49  ;;  %v4241_v4 = vadd.f32 %v3239_v30, %v4047_v27  ;;  %v3240_v51 = vadd.f32 %v4168_v0, %v3173_v45 }
 0x1df   : > { %v3503_v62 = vpop.eup %3502  ;;  %v2236_v35 = vmul.f32 %v2204_v57, %v2204_v57  ;;  %3514 = vpow2.f32 %v2170_v53  ;;  %v2176_v60 = vmul.f32 1.442695, %v2118_v10  ;;  %v2394_v26 = vmul.f32 %v2362_v47, %v4102_v3 }
 0x1e0   : > { %v2363_v59 = vmul.f32 %v3503_v62, %v2875_v43  ;;  %v3505_v24 = vpop.eup %3504  ;;  %v2239_v12 = vmul.f32 %v2207_v2, %v2207_v2  ;;  %3516 = vpow2.f32 %v2166_v52  ;;  %v2116_v9 = vmin.f32 %v4241_v4, 20.0 }
 0x1e1   : > { %v4246_v16 = vadd.f32 %v3240_v51, %v4047_v27  ;;  %v3507_v17 = vpop.eup %3506  ;;  %v2300_v8 = vadd.f32 1.0, %v2236_v35  ;;  %v2205_v0 = vadd.f32 1.0, %v3505_v24  ;;  %v2392_v45 = vmul.f32 %v2360_v11, %v4105_v22 }
 0x1e2   : > { %v2395_v20 = vmul.f32 %v2363_v59, %v4123_v36  ;;  %v2361_v14 = vmul.f32 %v3507_v17, %v2873_v48  ;;  %v2303_v33 = vadd.f32 1.0, %v2239_v12  ;;  %3518 = vpow2.f32 %v2176_v60 }
 0x1e3   : > { %3520 = vrcp.f32 %v2300_v8  ;;  %v2237_v37 = vmul.f32 %v2205_v0, %v2205_v0  ;;  %v2172_v39 = vmul.f32 1.442695, %v2116_v9  ;;  %v2119_v3 = vmin.f32 %v4246_v16, 20.0 }
 0x1e4   : > { %v3002_v19 = vpack.c.bf16 %v2395_v20, %v2394_v26  ;;  %v3509_v6 = vpop.eup %3508  ;;  %v2393_v30 = vmul.f32 %v2361_v14, %v4132_v50  ;;  %3522 = vrcp.f32 %v2303_v33  ;;  %v3241_v36 = vadd.f32 %v4173_v32, %v4207_v58 }
 0x1e5   : > { %v3511_v15 = vpop.eup %3510  ;;  %v2301_v22 = vadd.f32 1.0, %v2237_v37  ;;  %v2210_v38 = vadd.f32 1.0, %v3509_v6  ;;  %3524 = vpow2.f32 %v2172_v39  ;;  %v2178_v44 = vmul.f32 1.442695, %v2119_v3 }
 0x1e6   : > { %3050 = vst [vmem:[%s4149_s8 + $0x38] sm:$0xff] %v3002_v19   ;;  %v2997_v7 = vpack.c.bf16 %v2393_v30, %v2392_v45  ;;  %v2208_v43 = vadd.f32 1.0, %v3511_v15  ;;  %v4257_v46 = vadd.f32 %v3241_v36, %v4047_v27  ;;  %v3242_v47 = vadd.f32 %v4190_v42, %v4225_v13 }
 0x1e7   : > { %3526 = vrcp.f32 %v2301_v22  ;;  %v4259_v50 = vmul.f32 %v2210_v38, %v2210_v38  ;;  %v3243_v48 = vadd.f32 %v4194_v41, %v1766_v34  ;;  %v3244_v53 = vadd.f32 %v4196_v56, %v3177_v61 }
 0x1e8   : > { %v3513_v32 = vpop.eup %3512  ;;  %3049 = vst [vmem:[%s4149_s8 + $0x30] sm:$0xff] %v2997_v7   ;;  %v4265_v58 = vmul.f32 %v2208_v43, %v2208_v43  ;;  %3528 = vpow2.f32 %v2178_v44  ;;  %v2117_v23 = vmin.f32 %v4257_v46, 20.0  ;;  %v4271_v57 = vadd.f32 %v3242_v47, %v4047_v27 }
 0x1e9   : > { %v3515_v49 = vpop.eup %3514  ;;  %v2306_v11 = vadd.f32 1.0, %v4259_v50  ;;  %v2878_v42 = vadd.f32 -1.0, %v4228_v28  ;;  %v2876_v10 = vadd.f32 -1.0, %v2236_v35  ;;  %v2879_v56 = vadd.f32 -1.0, %v2239_v12 }
 0x1ea   : > { %v3517_v52 = vpop.eup %3516  ;;  %v2304_v41 = vadd.f32 1.0, %v4265_v58  ;;  %v2211_v13 = vadd.f32 1.0, %v3515_v49  ;;  %v2174_v34 = vmul.f32 1.442695, %v2117_v23  ;;  %v2122_v2 = vmin.f32 %v4271_v57, 20.0 }
 0x1eb   : > { %3530 = vrcp.f32 %v2306_v11  ;;  %v2209_v62 = vadd.f32 1.0, %v3517_v52  ;;  %v4277_v59 = vadd.f32 %v3243_v48, %v4047_v27  ;;  %v2366_v24 = vmul.f32 %v3513_v32, %v2878_v42 }
 0x1ec   : > { %v3519_v51 = vpop.eup %3518  ;;  %3532 = vrcp.f32 %v2304_v41  ;;  %v2243_v61 = vmul.f32 %v2211_v13, %v2211_v13  ;;  %v2184_v20 = vmul.f32 1.442695, %v2122_v2  ;;  %v4281_v8 = vadd.f32 %v3244_v53, %v4047_v27 }
 0x1ed   : > { %v3521_v60 = vpop.eup %3520  ;;  %v2241_v9 = vmul.f32 %v2209_v62, %v2209_v62  ;;  %v2214_v28 = vadd.f32 1.0, %v3519_v51  ;;  %3534 = vpow2.f32 %v2174_v34  ;;  %v2120_v35 = vmin.f32 %v4277_v59, 20.0 }
 0x1ee   : > { %v3523_v17 = vpop.eup %3522  ;;  %v2307_v26 = vadd.f32 1.0, %v2243_v61  ;;  %v2877_v45 = vadd.f32 -1.0, %v2237_v37  ;;  %v2364_v19 = vmul.f32 %v3521_v60, %v2876_v10  ;;  %v2398_v3 = vmul.f32 %v2366_v24, %v4153_v21 }
 0x1ef   : > { %v3525_v0 = vpop.eup %3524  ;;  %v2367_v12 = vmul.f32 %v3523_v17, %v2879_v56  ;;  %v2305_v14 = vadd.f32 1.0, %v2241_v9  ;;  %v4283_v33 = vmul.f32 %v2214_v28, %v2214_v28  ;;  %v2180_v6 = vmul.f32 1.442695, %v2120_v35 }
 0x1f0   : > { %3536 = vrcp.f32 %v2307_v26  ;;  %v2212_v39 = vadd.f32 1.0, %v3525_v0  ;;  %v2123_v37 = vmin.f32 %v4281_v8, 20.0  ;;  %v3245_v47 = vadd.f32 %v4198_v55, %v4237_v54 }
 0x1f1   : > { %v3527_v30 = vpop.eup %3526  ;;  %v2399_v36 = vmul.f32 %v2367_v12, %v4178_v18  ;;  %3538 = vrcp.f32 %v2305_v14  ;;  %v2310_v15 = vadd.f32 1.0, %v4283_v33  ;;  %v2396_v21 = vmul.f32 %v2364_v19, %v4171_v5 }
 0x1f2   : > { %v3529_v22 = vpop.eup %3528  ;;  %v2365_v38 = vmul.f32 %v3527_v30, %v2877_v45  ;;  %v4288_v7 = vmul.f32 %v2212_v39, %v2212_v39  ;;  %3540 = vpow2.f32 %v2184_v20  ;;  %v2186_v23 = vmul.f32 1.442695, %v2123_v37 }
 0x1f3   : > { %v3012_v43 = vpack.c.bf16 %v2399_v36, %v2398_v3  ;;  %v2215_v44 = vadd.f32 1.0, %v3529_v22  ;;  %3542 = vpow2.f32 %v2180_v6  ;;  %v4297_v53 = vadd.f32 %v3245_v47, %v4047_v27 }
 0x1f4   : > { %v2397_v18 = vmul.f32 %v2365_v38, %v4187_v31  ;;  %3544 = vrcp.f32 %v2310_v15  ;;  %v2308_v52 = vadd.f32 1.0, %v4288_v7  ;;  %v2882_v55 = vadd.f32 -1.0, %v4259_v50 }
 0x1f5   : > { %v3531_v48 = vpop.eup %3530  ;;  %3052 = vst [vmem:[%s4149_s8 + $0x48] sm:$0xff] %v3012_v43   ;;  %v2247_v32 = vmul.f32 %v2215_v44, %v2215_v44  ;;  %3546 = vpow2.f32 %v2186_v23  ;;  %v2880_v31 = vadd.f32 -1.0, %v4265_v58  ;;  %v2121_v41 = vmin.f32 %v4297_v53, 20.0 }
 0x1f6   : > { %v3533_v49 = vpop.eup %3532  ;;  %v3007_v11 = vpack.c.bf16 %v2397_v18, %v2396_v21  ;;  %v2370_v13 = vmul.f32 %v3531_v48, %v2882_v55  ;;  %v2883_v34 = vadd.f32 -1.0, %v2243_v61  ;;  %v2881_v10 = vadd.f32 -1.0, %v2241_v9 }
 0x1f7   : > { %v3535_v42 = vpop.eup %3534  ;;  %v2311_v5 = vadd.f32 1.0, %v2247_v32  ;;  %v2368_v62 = vmul.f32 %v3533_v49, %v2880_v31  ;;  %v2182_v51 = vmul.f32 1.442695, %v2121_v41  ;;  %v2886_v19 = vadd.f32 -1.0, %v4283_v33 }
 0x1f8   : > { %3051 = vst [vmem:[%s4149_s8 + $0x40] sm:$0xff] %v3007_v11   ;;  %v2213_v54 = vadd.f32 1.0, %v3535_v42  ;;  %v2402_v58 = vmul.f32 %v2370_v13, %v4202_v63  ;;  %v2887_v30 = vadd.f32 -1.0, %v2247_v32  ;;  %v2884_v22 = vadd.f32 -1.0, %v4288_v7 }
 0x1f9   : > { %3548 = vrcp.f32 %v2311_v5  ;;  %v2400_v26 = vmul.f32 %v2368_v62, %v4205_v1 }
 0x1fa   : > { %v3537_v27 = vpop.eup %3536  ;;  %3550 = vrcp.f32 %v2308_v52  ;;  %v2245_v2 = vmul.f32 %v2213_v54, %v2213_v54 }
 0x1fb   : > { %v3539_v56 = vpop.eup %3538  ;;  %v2371_v60 = vmul.f32 %v3537_v27, %v2883_v34  ;;  %3552 = vpow2.f32 %v2182_v51 }
 0x1fc   : > { %v3541_v50 = vpop.eup %3540  ;;  %v2369_v24 = vmul.f32 %v3539_v56, %v2881_v10  ;;  %v2309_v28 = vadd.f32 1.0, %v2245_v2  ;;  %v2885_v21 = vadd.f32 -1.0, %v2245_v2 }
 0x1fd   : > { %v2403_v17 = vmul.f32 %v2371_v60, %v4217_v40  ;;  %v2218_v61 = vadd.f32 1.0, %v3541_v50  ;;  %v3543_v9 = vpop.eup %3542 }
 0x1fe   : > { %v2401_v20 = vmul.f32 %v2369_v24, %v4221_v29  ;;  %3554 = vrcp.f32 %v2309_v28  ;;  %v3545_v35 = vpop.eup %3544  ;;  %v2216_v45 = vadd.f32 1.0, %v3543_v9 }
 0x1ff   : > { %v3022_v0 = vpack.c.bf16 %v2403_v17, %v2402_v58  ;;  %v2250_v12 = vmul.f32 %v2218_v61, %v2218_v61  ;;  %v3547_v39 = vpop.eup %3546  ;;  %v2374_v40 = vmul.f32 %v3545_v35, %v2886_v19 }
 0x200   : > { %v3017_v14 = vpack.c.bf16 %v2401_v20, %v2400_v26  ;;  %v2248_v6 = vmul.f32 %v2216_v45, %v2216_v45  ;;  %v2219_v3 = vadd.f32 1.0, %v3547_v39 }
 0x201   : > { %3054 = vst [vmem:[%s4149_s8 + $0x58] sm:$0xff] %v3022_v0   ;;  %v2314_v63 = vadd.f32 1.0, %v2250_v12  ;;  %v2406_v33 = vmul.f32 %v2374_v40, %v4234_v25  ;;  %v2890_v42 = vadd.f32 -1.0, %v2250_v12 }
 0x202   : > { %3053 = vst [vmem:[%s4149_s8 + $0x50] sm:$0xff] %v3017_v14   ;;  %v2251_v29 = vmul.f32 %v2219_v3, %v2219_v3  ;;  %v2312_v38 = vadd.f32 1.0, %v2248_v6  ;;  %v2888_v13 = vadd.f32 -1.0, %v2248_v6 }
 0x203   : > { %v3549_v36 = vpop.eup %3548  ;;  %3556 = vrcp.f32 %v2314_v63 }
 0x204   : > { %v3551_v1 = vpop.eup %3550  ;;  %v2375_v15 = vmul.f32 %v3549_v36, %v2887_v30  ;;  %v2315_v44 = vadd.f32 1.0, %v2251_v29  ;;  %v2891_v5 = vadd.f32 -1.0, %v2251_v29 }
 0x205   : > { %v3553_v37 = vpop.eup %3552  ;;  %v2372_v47 = vmul.f32 %v3551_v1, %v2884_v22 }
 0x206   : > { %v2407_v43 = vmul.f32 %v2375_v15, %v4246_v16  ;;  %v2217_v18 = vadd.f32 1.0, %v3553_v37  ;;  %3558 = vrcp.f32 %v2315_v44 }
 0x207   : > { %3560 = vrcp.f32 %v2312_v38  ;;  %v2404_v7 = vmul.f32 %v2372_v47, %v4241_v4 }
 0x208   : > { %v3555_v48 = vpop.eup %3554  ;;  %v3032_v32 = vpack.c.bf16 %v2407_v43, %v2406_v33  ;;  %v2249_v49 = vmul.f32 %v2217_v18, %v2217_v18 }
 0x209   : > { %v2373_v23 = vmul.f32 %v3555_v48, %v2885_v21 }
 0x20a   : > { %3056 = vst [vmem:[%s4149_s8 + $0x68] sm:$0xff] %v3032_v32   ;;  %v2313_v52 = vadd.f32 1.0, %v2249_v49  ;;  %v2889_v10 = vadd.f32 -1.0, %v2249_v49 }
 0x20b   : > { %v2405_v11 = vmul.f32 %v2373_v23, %v4257_v46 }
 0x20c   : > { %3562 = vrcp.f32 %v2313_v52 }
 0x20d   : > { %v3027_v25 = vpack.c.bf16 %v2405_v11, %v2404_v7  ;;  %v3557_v16 = vpop.eup %3556 }
 0x20e   : > { %v2378_v55 = vmul.f32 %v3557_v16, %v2890_v42 }
 0x20f   : > { %3055 = vst [vmem:[%s4149_s8 + $0x60] sm:$0xff] %v3027_v25  }
 0x210   : > { %v3559_v31 = vpop.eup %3558  ;;  %v2410_v4 = vmul.f32 %v2378_v55, %v4271_v57 }
 0x211   : > { %v3561_v54 = vpop.eup %3560  ;;  %v2379_v41 = vmul.f32 %v3559_v31, %v2891_v5 }
 0x212   : > { %v2376_v34 = vmul.f32 %v3561_v54, %v2888_v13 }
 0x213   : > { %v2411_v46 = vmul.f32 %v2379_v41, %v4281_v8 }
 0x214   : > { %v2408_v51 = vmul.f32 %v2376_v34, %v4277_v59 }
 0x215   : > { %v3042_v62 = vpack.c.bf16 %v2411_v46, %v2410_v4 }
 0x216   : > { %v3563_v27 = vpop.eup %3562 }
 0x217   : > { %v2377_v2 = vmul.f32 %v3563_v27, %v2889_v10  ;;  %3058 = vst [vmem:[%s4149_s8 + $0x78] sm:$0xff] %v3042_v62  }
 0x219   : > { %v2409_v56 = vmul.f32 %v2377_v2, %v4297_v53 }
 0x21b   : > { %v3037_v57 = vpack.c.bf16 %v2409_v56, %v2408_v51 }
 0x21d   : > { %3057 = vst [vmem:[%s4149_s8 + $0x70] sm:$0xff] %v3037_v57  }
 0x21e   : > { %3577 = shalt.err (!%p3574_p5)
}
 0x21f   : > { %s3578_s29 = scalar_lea.hbm %s4328_s14, 2048  ;;  %s3582_s6 = scalar_lea.hbm %s4386_s4, 4096 }
 0x220   : > { %p3579_p6 = scmp.ne.s32.totalorder %s4328_s14, %s3578_s29  ;;  %p3583_p10 = scmp.lt.u32.totalorder %s4328_s14, %s4386_s4 }
 0x221   : > { %p3584_p11 = scmp.lt.u32.totalorder %s3582_s6, %s3578_s29  ;;  %p3586_p13 = scmp.lt.u32.totalorder %s3578_s29, %s4328_s14 }
 0x222   : > { %p3580_p7 = pnand %p3579_p6, %p3713_p4 }
 0x223   : > { %p3585_p12 = por %p3584_p11, %p3583_p10 }
 0x224   : > { %p3581_p9 = pneg %p3580_p7 }
 0x225   : > { %p3587_p0 = por %p3586_p13, %p3585_p12 }
 0x227   : > { %p3588_p1 = pnand %p3587_p0, %p3581_p9 }
 0x229   : > { %3591 = shalt.err (!%p3588_p1)
}
 0x22a   : > { %s3647_s10 = smov 64  }
 0x22b   : > { %3284 = dma.vmem_to_hbm [thread:$0]  (%p3713_p4), %s4330_s11, 2048, %s4328_s14, %s4335_s18, %s3647_s10, %s3647_s10, %s3645_s9  }
 0x22c PF: > { %p3291_p2 = scmp.ge.s32.totalorder %s3642_s20, 2  ;;  %s2605_s12 = sand.u32 1, %s3622_s15  }
 0x22d   : > { %s2606_s13 = scalar_lea.sflag [#allocation4], %s2605_s12 }
 0x22e   : > { %p3287_p3 = pnand %p3291_p2, %p3720_p8 }
 0x230   : > { %3617 = dma.done.wait (!%p3287_p3), %s2606_s13, 2048  }
 0x231   : > { %3619 = vsyncadd (!%p3287_p3), %s2606_s13, 4294965248  ;;  %s17_s20 = sadd.s32 1, %s3642_s20   ;;  %s4389_s15 = smov %s3626_s16 }
 0x232   : > { %p14_p5 = scmp.ge.s32.totalorder %s17_s20, 4   ;;  %s4390_s16 = smov %s3630_s17 }
 0x233   : > { %s4391_s17 = smov %s3726_s28  ;;  %s4392_s18 = smov %s3638_s19 }
 0x234   : > { %s4393_s19 = smov %s4395_s23  ;;  %16 = sbr.rel (!%p14_p5) target bundleno = 4 (0x4), region = 85 }
 0x23b   :  { %2611 = vsyncpa [#allocation4], 1 }
 0x23c   :  { %2613 = vsyncpa [#allocation4 + $0x1], 1 }

</bundles_post_ra>
